<compile_context>
chip_gen: v7x
topology: tpu7x:2x2x1
jax: 0.10.0
libtpu: 0.0.40
codegen_flags: <defaults>
</compile_context>

<pallas_src>
import numpy as np
import jax
import jax.numpy as jnp
from jax import lax
from jax.experimental import pallas as pl
from jax.experimental.pallas import tpu as pltpu

# ---------------- configuration (small shapes consistent with the module) ----
B    = 2          # batch
C    = 16         # num_channels (conv "H" axis)
T    = 64         # num_time_points (conv "W" axis)
NC   = 4          # num_classes
F1   = 8
D    = 2
DF1  = D * F1     # 16
F2   = 16
KT   = 64         # conv1 temporal kernel (hardcoded in torch module)
PAD1 = 32         # conv1 padding       (hardcoded)
KS   = 16         # separable temporal kernel (hardcoded)
PAD2 = 8          # separable padding   (hardcoded)

TOUT   = T + 2 * PAD1 - KT + 1    # 65   conv1 output width (torch semantics)
W1     = TOUT // 4                # 16   width after avgpool1 (kernel 4)
TOUTP  = 4 * W1                   # 64   conv1 columns actually consumed by the pool
WP     = 48                       # padded pooled width (8 zeros | 16 data | 24 zeros)
WOUT3  = W1 + 2 * PAD2 - KS + 1   # 17   width after separable conv
WOUT3P = 32                       # lane-padded separable output width
W2     = WOUT3 // 8               # 2    width after avgpool2 (kernel 8)
FLAT   = F2 * W2                  # 32   flattened classifier features
assert FLAT == F2 * (T // 32), "classifier in_features mismatch"
EPS = 1e-5

# batch packing: SPB samples share one grid step, stacked on the sublane axis
# (raises MXU row utilization; use up to 8 samples/step).
SPB   = B if B <= 8 else 8
assert B % SPB == 0
NSTEP = B // SPB
SC    = SPB * C                   # packed input rows
SDF   = SPB * DF1                 # packed depthwise-output rows
SF2   = SPB * F2                  # packed separable-output rows


# ------------------------------- Pallas kernel -------------------------------
def eegnet_kernel(x_ref, wdbd_ref, w1t_ref, gsel_ref, b2_ref, p1m_ref,
                  wsep_ref, b3_ref, wcls_ref, bc_ref, eyec_ref, eyes_ref,
                  out_ref, pstk_scr):
    x = x_ref[0]                                                      # (SC, T)

    # depthwise channel mix first (block-diagonal over the packed samples,
    # bn2 scale folded in); it commutes with the temporal conv1, so conv1
    # becomes ONE matmul below.
    z = jnp.dot(wdbd_ref[...], x, preferred_element_type=jnp.float32)         # (SDF, T)

    # conv1 (1x64 temporal, pad 32) for all F1 filters as a single fused
    # Toeplitz matmul (bn1 scale folded; only the 64 pooled columns are kept).
    big = jnp.dot(z, w1t_ref[...], preferred_element_type=jnp.float32)        # (SDF, F1*TOUTP)

    # each row (sample, f*D+d) keeps only its own filter-f block (VPU select)
    y = gsel_ref[0] * big[:, :TOUTP]
    for f in range(1, F1):
        y = y + gsel_ref[f] * big[:, f * TOUTP:(f + 1) * TOUTP]               # (SDF, TOUTP)

    # bn2 bias (+ folded bn1 bias) and ELU
    y = y + b2_ref[...]
    y = jnp.where(y > 0, y, jnp.exp(jnp.minimum(y, 0.0)) - 1.0)

    # avgpool1 (kernel 4) with the PAD2 zero-padding folded into the pool matrix
    p1p = jnp.dot(y, p1m_ref[...], preferred_element_type=jnp.float32)        # (SDF, WP)

    # im2col: stack the 16 shifted time-windows on the sublane axis so the
    # whole separable stage (1x16 temporal + 1x1 pointwise + bn3 scale) is one
    # matmul with K = KS*SDF.
    for k in range(KS):
        pstk_scr[k * SDF:(k + 1) * SDF, :] = p1p[:, k:k + WOUT3P]

    y3 = jnp.dot(wsep_ref[...], pstk_scr[...],
                 preferred_element_type=jnp.float32) + b3_ref[...]            # (SF2, WOUT3P)
    y3 = jnp.where(y3 > 0, y3, jnp.exp(jnp.minimum(y3, 0.0)) - 1.0)

    # avgpool2 + flatten + classifier fused on the VPU.  wcls already contains
    # the /8 pooling and is zero for lanes >= 16 (masks the unused conv tail).
    eyec = eyec_ref[...]                                                      # (NC, NC)
    eyes = eyes_ref[...]                                                      # (SPB, SPB)
    r = jnp.zeros((SF2, NC), jnp.float32)
    for nc in range(NC):
        col = jnp.sum(wcls_ref[nc] * y3, axis=1, keepdims=True)               # (SF2, 1)
        r = r + col * eyec[nc:nc + 1, :]                                      # place in lane nc
    acc = jnp.zeros((SPB, NC), jnp.float32)
    for s in range(SPB):
        part = jnp.sum(r[s * F2:(s + 1) * F2, :], axis=0, keepdims=True)      # (1, NC)
        acc = acc + eyes[:, s:s + 1] * part                                   # place in row s
    logits = acc + bc_ref[...]                                                # (SPB, NC)

    # log_softmax over the class (lane) axis -> lane-dense output
    m = jnp.max(logits, axis=1, keepdims=True)
    zz = logits - m
    lse = jnp.log(jnp.sum(jnp.exp(zz), axis=1, keepdims=True))
    out_ref[0, :, :] = zz - lse


def _const_spec(shape):
    n = len(shape)
    return pl.BlockSpec(shape, lambda i, _n=n: (0,) * _n)


@jax.jit
def eegnet_pallas(xr, wdbd, w1t, gsel, b2v, p1m, wsep, b3v, wcls, bcr,
                  eyec, eyes):
    out = pl.pallas_call(
        eegnet_kernel,
        out_shape=jax.ShapeDtypeStruct((NSTEP, SPB, NC), jnp.float32),
        grid=(NSTEP,),
        in_specs=[
            pl.BlockSpec((1, SC, T), lambda i: (i, 0, 0)),  # packed (unpadded) input
            _const_spec((SDF, SC)),            # block-diag depthwise weights (bn2 scale folded)
            _const_spec((T, F1 * TOUTP)),      # fused conv1 Toeplitz (bn1 scale folded)
            _const_spec((F1, SDF, 1)),         # per-row filter-group selectors
            _const_spec((SDF, 1)),             # bn2 bias (+ folded bn1 bias)
            _const_spec((TOUTP, WP)),          # avgpool1 matrix (PAD2 padding folded)
            _const_spec((SF2, KS * SDF)),      # separable temporal+pointwise (+bn3 scale)
            _const_spec((SF2, 1)),             # bn3 bias
            _const_spec((NC, SF2, WOUT3P)),    # classifier (avgpool2 + flatten folded)
            _const_spec((1, NC)),              # classifier bias
            _const_spec((NC, NC)),             # class one-hot (lane-scatter helper)
            _const_spec((SPB, SPB)),           # sample one-hot (sublane-scatter helper)
        ],
        out_specs=pl.BlockSpec((1, SPB, NC), lambda i: (i, 0, 0)),
        scratch_shapes=[pltpu.VMEM((KS * SDF, WOUT3P), jnp.float32)],  # im2col buffer
        compiler_params=pltpu.CompilerParams(dimension_semantics=("parallel",)),
    )(xr, wdbd, w1t, gsel, b2v, p1m, wsep, b3v, wcls, bcr, eyec, eyes)
    return out.reshape(B, NC)


# --------------------------- parameter setup (glue) ---------------------------
def make_raw_params(key):
    ks = jax.random.split(key, 10)
    nrm = lambda k, s, sc=0.2: sc * jax.random.normal(k, s, jnp.float32)

    def bn_params(k, n):
        k1, k2, k3, k4 = jax.random.split(k, 4)
        gamma = 0.5 + jax.random.uniform(k1, (n,), jnp.float32)
        beta = 0.2 * jax.random.normal(k2, (n,), jnp.float32)
        mean = 0.2 * jax.random.normal(k3, (n,), jnp.float32)
        var = 0.5 + jax.random.uniform(k4, (n,), jnp.float32)
        return gamma, beta, mean, var

    return dict(
        w1=nrm(ks[0], (F1, 1, 1, KT)),          # Conv2d(1, F1, (1,64))
        wd=nrm(ks[1], (DF1, 1, C, 1)),          # depthwise Conv2d(F1, D*F1, (C,1), groups=F1)
        ws1=nrm(ks[2], (F2, DF1, 1, KS)),       # separable: Conv2d(D*F1, F2, (1,16))
        ws2=nrm(ks[3], (F2, F2, 1, 1)),         # separable: Conv2d(F2, F2, (1,1))
        wc=nrm(ks[4], (NC, FLAT)),              # Linear
        bc=nrm(ks[5], (NC,)),
        bn1=bn_params(ks[6], F1),
        bn2=bn_params(ks[7], DF1),
        bn3=bn_params(ks[8], F2),
    )


def fold_params(raw):
    g1, be1, m1, v1 = raw['bn1']
    g2, be2, m2, v2 = raw['bn2']
    g3, be3, m3, v3 = raw['bn3']
    s1 = g1 / jnp.sqrt(v1 + EPS); bb1 = be1 - s1 * m1
    s2 = g2 / jnp.sqrt(v2 + EPS); bb2 = be2 - s2 * m2
    s3 = g3 / jnp.sqrt(v3 + EPS); bb3 = be3 - s3 * m3

    eye_s = jnp.eye(SPB, dtype=jnp.float32)

    # depthwise (Cx1, groups=F1) channel-mix weights, bn2 scale folded in,
    # block-diagonal over the packed samples
    wd2 = raw['wd'][:, 0, :, 0]                                        # (DF1, C)
    wdbd = jnp.einsum('st,jc->sjtc', eye_s, wd2 * s2[:, None]).reshape(SDF, SC)

    # conv1 -> one Toeplitz matrix for all F1 filters against the UNPADDED
    # input (the PAD1 zeros contribute nothing); keep only the 64 output
    # columns avgpool1 consumes; bn1 scale folded.
    j_idx = jnp.arange(T)[:, None]            # unpadded input time index
    t_idx = jnp.arange(TOUTP)[None, :]        # conv1 output column
    k_idx = j_idx + PAD1 - t_idx              # kernel tap
    mask = (k_idx >= 0) & (k_idx < KT)
    w1k = raw['w1'][:, 0, 0, :]                                        # (F1, KT)
    w1t = jnp.where(mask[None], w1k[:, jnp.clip(k_idx, 0, KT - 1)], 0.0)
    w1t = s1[:, None, None] * w1t                                      # (F1, T, TOUTP)
    w1t_all = jnp.transpose(w1t, (1, 0, 2)).reshape(T, F1 * TOUTP)

    # per-row (sample, f*D+d) filter-group selector masks
    grp = jnp.tile(jnp.repeat(jnp.arange(F1), D), SPB)                 # (SDF,)
    gsel = (jnp.arange(F1)[:, None] == grp[None, :]).astype(jnp.float32)[..., None]

    # bn2 bias (bn1 bias folded through the depthwise conv), tiled per sample
    kconst = jnp.repeat(bb1, D) * jnp.sum(wd2, axis=1)                 # (DF1,)
    b2v = jnp.tile(bb2 + s2 * kconst, SPB)[:, None]

    # avgpool1 matrix (kernel 4) with the separable-conv PAD2 zero padding folded in
    tcol = jnp.arange(TOUTP)[:, None]
    vcol = jnp.arange(WP)[None, :]
    p1m = ((tcol // 4 + PAD2) == vcol).astype(jnp.float32) / 4.0       # (TOUTP, WP)

    # separable conv: temporal (1x16) + pointwise (1x1) + bn3 scale as one
    # weight, block-diagonal over samples, matching the im2col row order (k,s,j)
    ws1 = raw['ws1'][:, :, 0, :]                                       # (F2, DF1, KS)
    ws2 = raw['ws2'][:, :, 0, 0]                                       # (F2, F2)
    wfull = jnp.einsum('ab,bjk->ajk', ws2, ws1) * s3[:, None, None]    # (F2, DF1, KS)
    wsep = jnp.einsum('st,ajk->saktj', eye_s, wfull).reshape(SF2, KS * SDF)

    b3v = jnp.tile(bb3, SPB)[:, None]                                  # (SF2, 1)

    # classifier with avgpool2 (kernel 8) and the flatten folded in; zero for t>=16
    wc3 = raw['wc'].reshape(NC, F2, W2)
    tpos = jnp.arange(WOUT3P)
    wcls = jnp.where((tpos < 8 * W2)[None, None, :],
                     wc3[:, :, jnp.clip(tpos // 8, 0, W2 - 1)] / 8.0, 0.0)
    wcls = jnp.tile(wcls, (1, SPB, 1))                                 # (NC, SF2, WOUT3P)

    bcr = raw['bc'][None, :]                                           # (1, NC)
    eyec = jnp.eye(NC, dtype=jnp.float32)
    eyes = eye_s

    return (wdbd, w1t_all, gsel, b2v, p1m, wsep, b3v, wcls, bcr, eyec, eyes)


# --------------------------- pure-JAX reference ------------------------------
def reference_forward(x, raw):
    def bn(y, p):
        g, b, m, v = p
        s = g / jnp.sqrt(v + EPS)
        return (y - m[None, :, None, None]) * s[None, :, None, None] + b[None, :, None, None]

    dn = ('NCHW', 'OIHW', 'NCHW')
    hp = lax.Precision.HIGHEST
    y = lax.conv_general_dilated(x, raw['w1'], (1, 1), ((0, 0), (PAD1, PAD1)),
                                 dimension_numbers=dn, precision=hp)
    y = bn(y, raw['bn1'])
    y = lax.conv_general_dilated(y, raw['wd'], (1, 1), ((0, 0), (0, 0)),
                                 dimension_numbers=dn, feature_group_count=F1,
                                 precision=hp)
    y = jax.nn.elu(bn(y, raw['bn2']))
    y = lax.reduce_window(y, 0.0, lax.add, (1, 1, 1, 4), (1, 1, 1, 4), 'VALID') / 4.0
    y = lax.conv_general_dilated(y, raw['ws1'], (1, 1), ((0, 0), (PAD2, PAD2)),
                                 dimension_numbers=dn, precision=hp)
    y = lax.conv_general_dilated(y, raw['ws2'], (1, 1), ((0, 0), (0, 0)),
                                 dimension_numbers=dn, precision=hp)
    y = jax.nn.elu(bn(y, raw['bn3']))
    y = lax.reduce_window(y, 0.0, lax.add, (1, 1, 1, 8), (1, 1, 1, 8), 'VALID') / 8.0
    y = y.reshape(y.shape[0], -1)
    y = y @ raw['wc'].T + raw['bc']
    return jax.nn.log_softmax(y, axis=1)


# ----------------------------------- main -------------------------------------
if __name__ == "__main__":
    key = jax.random.PRNGKey(0)
    kx, kp = jax.random.split(key)
    x = jax.random.normal(kx, (B, 1, C, T), jnp.float32)      # NCHW, like PyTorch
    raw = make_raw_params(kp)

    folded = fold_params(raw)
    xr = x[:, 0, :, :].reshape(NSTEP, SC, T)                  # SPB samples per grid step

    out = eegnet_pallas(xr, *folded)
    out = jax.block_until_ready(out)                          # (B, NC) log-probs

    ref = jax.block_until_ready(reference_forward(x, raw))
    np.testing.assert_allclose(np.asarray(out), np.asarray(ref), rtol=1e-2, atol=1e-2)

    print("KERNEL_OK")
</pallas_src>

<mosaic_0001>
module attributes {stable_mosaic.version = 11 : i64} {
  func.func @eegnet_kernel(%arg0: i32, %arg1: memref<1x32x64xf32, #tpu.memory_space<vmem>>, %arg2: memref<32x32xf32, #tpu.memory_space<vmem>>, %arg3: memref<64x512xf32, #tpu.memory_space<vmem>>, %arg4: memref<8x32x1xf32, #tpu.memory_space<vmem>>, %arg5: memref<32x1xf32, #tpu.memory_space<vmem>>, %arg6: memref<64x48xf32, #tpu.memory_space<vmem>>, %arg7: memref<32x512xf32, #tpu.memory_space<vmem>>, %arg8: memref<32x1xf32, #tpu.memory_space<vmem>>, %arg9: memref<4x32x32xf32, #tpu.memory_space<vmem>>, %arg10: memref<1x4xf32, #tpu.memory_space<vmem>>, %arg11: memref<4x4xf32, #tpu.memory_space<vmem>>, %arg12: memref<2x2xf32, #tpu.memory_space<vmem>>, %arg13: memref<1x2x4xf32, #tpu.memory_space<vmem>>, %arg14: memref<512x32xf32, #tpu.memory_space<vmem>>) attributes {dimension_semantics = [#tpu.dimension_semantics<parallel>], iteration_bounds = array<i64: 1>, scalar_prefetch = 0 : i64, scratch_operands = 1 : i64, tpu.core_type = #tpu.core_type<tc>, window_params = [{transform_indices = @transform_0, window_bounds = array<i64: 1, 32, 64>}, {pipeline_mode = #tpu.pipeline_mode<synchronous>, transform_indices = @transform_1, window_bounds = array<i64: 32, 32>}, {pipeline_mode = #tpu.pipeline_mode<synchronous>, transform_indices = @transform_2, window_bounds = array<i64: 64, 512>}, {pipeline_mode = #tpu.pipeline_mode<synchronous>, transform_indices = @transform_3, window_bounds = array<i64: 8, 32, 1>}, {pipeline_mode = #tpu.pipeline_mode<synchronous>, transform_indices = @transform_4, window_bounds = array<i64: 32, 1>}, {pipeline_mode = #tpu.pipeline_mode<synchronous>, transform_indices = @transform_5, window_bounds = array<i64: 64, 48>}, {pipeline_mode = #tpu.pipeline_mode<synchronous>, transform_indices = @transform_6, window_bounds = array<i64: 32, 512>}, {pipeline_mode = #tpu.pipeline_mode<synchronous>, transform_indices = @transform_7, window_bounds = array<i64: 32, 1>}, {pipeline_mode = #tpu.pipeline_mode<synchronous>, transform_indices = @transform_8, window_bounds = array<i64: 4, 32, 32>}, {pipeline_mode = #tpu.pipeline_mode<synchronous>, transform_indices = @transform_9, window_bounds = array<i64: 1, 4>}, {pipeline_mode = #tpu.pipeline_mode<synchronous>, transform_indices = @transform_10, window_bounds = array<i64: 4, 4>}, {pipeline_mode = #tpu.pipeline_mode<synchronous>, transform_indices = @transform_11, window_bounds = array<i64: 2, 2>}, {transform_indices = @transform_12, window_bounds = array<i64: 1, 2, 4>}]} {
    %c0 = arith.constant 0 : index
    %c0_0 = arith.constant 0 : index
    %c0_1 = arith.constant 0 : index
    %0 = vector.load %arg1[%c0, %c0_0, %c0_1] : memref<1x32x64xf32, #tpu.memory_space<vmem>>, vector<1x32x64xf32>
    %1 = vector.shape_cast %0 : vector<1x32x64xf32> to vector<32x64xf32>
    %c0_2 = arith.constant 0 : index
    %c0_3 = arith.constant 0 : index
    %2 = vector.load %arg2[%c0_2, %c0_3] : memref<32x32xf32, #tpu.memory_space<vmem>>, vector<32x32xf32>
    %cst = arith.constant dense<0.000000e+00> : vector<32x64xf32>
    %3 = tpu.matmul %2, %1, %cst {dimension_numbers = #tpu.dot_dimension_numbers<[1], [0], [0], [1], [0, 0, 1, 1], [], []>} : vector<32x32xf32>, vector<32x64xf32>, vector<32x64xf32> -> vector<32x64xf32>
    %c0_4 = arith.constant 0 : index
    %c0_5 = arith.constant 0 : index
    %4 = vector.load %arg3[%c0_4, %c0_5] : memref<64x512xf32, #tpu.memory_space<vmem>>, vector<64x512xf32>
    %cst_6 = arith.constant dense<0.000000e+00> : vector<32x512xf32>
    %5 = tpu.matmul %3, %4, %cst_6 {dimension_numbers = #tpu.dot_dimension_numbers<[1], [0], [0], [1], [0, 0, 1, 1], [], []>} : vector<32x64xf32>, vector<64x512xf32>, vector<32x512xf32> -> vector<32x512xf32>
    %c0_7 = arith.constant 0 : index
    %c0_8 = arith.constant 0 : index
    %c0_9 = arith.constant 0 : index
    %6 = vector.load %arg4[%c0_7, %c0_8, %c0_9] : memref<8x32x1xf32, #tpu.memory_space<vmem>>, vector<1x32x1xf32>
    %7 = vector.shape_cast %6 : vector<1x32x1xf32> to vector<32x1xf32>
    %8 = vector.extract_strided_slice %5 {offsets = [0, 0], sizes = [32, 64], strides = [1, 1]} : vector<32x512xf32> to vector<32x64xf32>
    %9 = vector.broadcast %7 : vector<32x1xf32> to vector<32x64xf32>
    %10 = arith.mulf %9, %8 : vector<32x64xf32>
    %c1 = arith.constant 1 : index
    %c0_10 = arith.constant 0 : index
    %c0_11 = arith.constant 0 : index
    %11 = vector.load %arg4[%c1, %c0_10, %c0_11] : memref<8x32x1xf32, #tpu.memory_space<vmem>>, vector<1x32x1xf32>
    %12 = vector.shape_cast %11 : vector<1x32x1xf32> to vector<32x1xf32>
    %13 = vector.extract_strided_slice %5 {offsets = [0, 64], sizes = [32, 64], strides = [1, 1]} : vector<32x512xf32> to vector<32x64xf32>
    %14 = vector.broadcast %12 : vector<32x1xf32> to vector<32x64xf32>
    %15 = arith.mulf %14, %13 : vector<32x64xf32>
    %16 = arith.addf %10, %15 : vector<32x64xf32>
    %c2 = arith.constant 2 : index
    %c0_12 = arith.constant 0 : index
    %c0_13 = arith.constant 0 : index
    %17 = vector.load %arg4[%c2, %c0_12, %c0_13] : memref<8x32x1xf32, #tpu.memory_space<vmem>>, vector<1x32x1xf32>
    %18 = vector.shape_cast %17 : vector<1x32x1xf32> to vector<32x1xf32>
    %19 = vector.extract_strided_slice %5 {offsets = [0, 128], sizes = [32, 64], strides = [1, 1]} : vector<32x512xf32> to vector<32x64xf32>
    %20 = vector.broadcast %18 : vector<32x1xf32> to vector<32x64xf32>
    %21 = arith.mulf %20, %19 : vector<32x64xf32>
    %22 = arith.addf %16, %21 : vector<32x64xf32>
    %c3 = arith.constant 3 : index
    %c0_14 = arith.constant 0 : index
    %c0_15 = arith.constant 0 : index
    %23 = vector.load %arg4[%c3, %c0_14, %c0_15] : memref<8x32x1xf32, #tpu.memory_space<vmem>>, vector<1x32x1xf32>
    %24 = vector.shape_cast %23 : vector<1x32x1xf32> to vector<32x1xf32>
    %25 = vector.extract_strided_slice %5 {offsets = [0, 192], sizes = [32, 64], strides = [1, 1]} : vector<32x512xf32> to vector<32x64xf32>
    %26 = vector.broadcast %24 : vector<32x1xf32> to vector<32x64xf32>
    %27 = arith.mulf %26, %25 : vector<32x64xf32>
    %28 = arith.addf %22, %27 : vector<32x64xf32>
    %c4 = arith.constant 4 : index
    %c0_16 = arith.constant 0 : index
    %c0_17 = arith.constant 0 : index
    %29 = vector.load %arg4[%c4, %c0_16, %c0_17] : memref<8x32x1xf32, #tpu.memory_space<vmem>>, vector<1x32x1xf32>
    %30 = vector.shape_cast %29 : vector<1x32x1xf32> to vector<32x1xf32>
    %31 = vector.extract_strided_slice %5 {offsets = [0, 256], sizes = [32, 64], strides = [1, 1]} : vector<32x512xf32> to vector<32x64xf32>
    %32 = vector.broadcast %30 : vector<32x1xf32> to vector<32x64xf32>
    %33 = arith.mulf %32, %31 : vector<32x64xf32>
    %34 = arith.addf %28, %33 : vector<32x64xf32>
    %c5 = arith.constant 5 : index
    %c0_18 = arith.constant 0 : index
    %c0_19 = arith.constant 0 : index
    %35 = vector.load %arg4[%c5, %c0_18, %c0_19] : memref<8x32x1xf32, #tpu.memory_space<vmem>>, vector<1x32x1xf32>
    %36 = vector.shape_cast %35 : vector<1x32x1xf32> to vector<32x1xf32>
    %37 = vector.extract_strided_slice %5 {offsets = [0, 320], sizes = [32, 64], strides = [1, 1]} : vector<32x512xf32> to vector<32x64xf32>
    %38 = vector.broadcast %36 : vector<32x1xf32> to vector<32x64xf32>
    %39 = arith.mulf %38, %37 : vector<32x64xf32>
    %40 = arith.addf %34, %39 : vector<32x64xf32>
    %c6 = arith.constant 6 : index
    %c0_20 = arith.constant 0 : index
    %c0_21 = arith.constant 0 : index
    %41 = vector.load %arg4[%c6, %c0_20, %c0_21] : memref<8x32x1xf32, #tpu.memory_space<vmem>>, vector<1x32x1xf32>
    %42 = vector.shape_cast %41 : vector<1x32x1xf32> to vector<32x1xf32>
    %43 = vector.extract_strided_slice %5 {offsets = [0, 384], sizes = [32, 64], strides = [1, 1]} : vector<32x512xf32> to vector<32x64xf32>
    %44 = vector.broadcast %42 : vector<32x1xf32> to vector<32x64xf32>
    %45 = arith.mulf %44, %43 : vector<32x64xf32>
    %46 = arith.addf %40, %45 : vector<32x64xf32>
    %c7 = arith.constant 7 : index
    %c0_22 = arith.constant 0 : index
    %c0_23 = arith.constant 0 : index
    %47 = vector.load %arg4[%c7, %c0_22, %c0_23] : memref<8x32x1xf32, #tpu.memory_space<vmem>>, vector<1x32x1xf32>
    %48 = vector.shape_cast %47 : vector<1x32x1xf32> to vector<32x1xf32>
    %49 = vector.extract_strided_slice %5 {offsets = [0, 448], sizes = [32, 64], strides = [1, 1]} : vector<32x512xf32> to vector<32x64xf32>
    %50 = vector.broadcast %48 : vector<32x1xf32> to vector<32x64xf32>
    %51 = arith.mulf %50, %49 : vector<32x64xf32>
    %52 = arith.addf %46, %51 : vector<32x64xf32>
    %c0_24 = arith.constant 0 : index
    %c0_25 = arith.constant 0 : index
    %53 = vector.load %arg5[%c0_24, %c0_25] : memref<32x1xf32, #tpu.memory_space<vmem>>, vector<32x1xf32>
    %54 = vector.broadcast %53 : vector<32x1xf32> to vector<32x64xf32>
    %55 = arith.addf %52, %54 : vector<32x64xf32>
    %cst_26 = arith.constant 0.000000e+00 : f32
    %56 = vector.broadcast %cst_26 : f32 to vector<32x64xf32>
    %57 = arith.cmpf ogt, %55, %56 : vector<32x64xf32>
    %cst_27 = arith.constant 0.000000e+00 : f32
    %58 = vector.broadcast %cst_27 : f32 to vector<32x64xf32>
    %59 = arith.minimumf %55, %58 : vector<32x64xf32>
    %60 = math.exp %59 : vector<32x64xf32>
    %cst_28 = arith.constant 1.000000e+00 : f32
    %61 = vector.broadcast %cst_28 : f32 to vector<32x64xf32>
    %62 = arith.subf %60, %61 : vector<32x64xf32>
    %63 = arith.select %57, %55, %62 : vector<32x64xi1>, vector<32x64xf32>
    %c0_29 = arith.constant 0 : index
    %c0_30 = arith.constant 0 : index
    %64 = vector.load %arg6[%c0_29, %c0_30] : memref<64x48xf32, #tpu.memory_space<vmem>>, vector<64x48xf32>
    %cst_31 = arith.constant dense<0.000000e+00> : vector<32x48xf32>
    %65 = tpu.matmul %63, %64, %cst_31 {dimension_numbers = #tpu.dot_dimension_numbers<[1], [0], [0], [1], [0, 0, 1, 1], [], []>} : vector<32x64xf32>, vector<64x48xf32>, vector<32x48xf32> -> vector<32x48xf32>
    %66 = vector.extract_strided_slice %65 {offsets = [0, 0], sizes = [32, 32], strides = [1, 1]} : vector<32x48xf32> to vector<32x32xf32>
    %c0_32 = arith.constant 0 : index
    %c0_33 = arith.constant 0 : index
    %67 = vector.load %arg14[%c0_32, %c0_33] : memref<512x32xf32, #tpu.memory_space<vmem>>, vector<32x32xf32>
    tpu.vector_store %arg14[%c0_32, %c0_33], %66 {strides = array<i32>} : memref<512x32xf32, #tpu.memory_space<vmem>>, vector<32x32xf32>,
    %68 = vector.extract_strided_slice %65 {offsets = [0, 1], sizes = [32, 32], strides = [1, 1]} : vector<32x48xf32> to vector<32x32xf32>
    %c32 = arith.constant 32 : index
    %c0_34 = arith.constant 0 : index
    %69 = vector.load %arg14[%c32, %c0_34] : memref<512x32xf32, #tpu.memory_space<vmem>>, vector<32x32xf32>
    tpu.vector_store %arg14[%c32, %c0_34], %68 {strides = array<i32>} : memref<512x32xf32, #tpu.memory_space<vmem>>, vector<32x32xf32>,
    %70 = vector.extract_strided_slice %65 {offsets = [0, 2], sizes = [32, 32], strides = [1, 1]} : vector<32x48xf32> to vector<32x32xf32>
    %c64 = arith.constant 64 : index
    %c0_35 = arith.constant 0 : index
    %71 = vector.load %arg14[%c64, %c0_35] : memref<512x32xf32, #tpu.memory_space<vmem>>, vector<32x32xf32>
    tpu.vector_store %arg14[%c64, %c0_35], %70 {strides = array<i32>} : memref<512x32xf32, #tpu.memory_space<vmem>>, vector<32x32xf32>,
    %72 = vector.extract_strided_slice %65 {offsets = [0, 3], sizes = [32, 32], strides = [1, 1]} : vector<32x48xf32> to vector<32x32xf32>
    %c96 = arith.constant 96 : index
    %c0_36 = arith.constant 0 : index
    %73 = vector.load %arg14[%c96, %c0_36] : memref<512x32xf32, #tpu.memory_space<vmem>>, vector<32x32xf32>
    tpu.vector_store %arg14[%c96, %c0_36], %72 {strides = array<i32>} : memref<512x32xf32, #tpu.memory_space<vmem>>, vector<32x32xf32>,
    %74 = vector.extract_strided_slice %65 {offsets = [0, 4], sizes = [32, 32], strides = [1, 1]} : vector<32x48xf32> to vector<32x32xf32>
    %c128 = arith.constant 128 : index
    %c0_37 = arith.constant 0 : index
    %75 = vector.load %arg14[%c128, %c0_37] : memref<512x32xf32, #tpu.memory_space<vmem>>, vector<32x32xf32>
    tpu.vector_store %arg14[%c128, %c0_37], %74 {strides = array<i32>} : memref<512x32xf32, #tpu.memory_space<vmem>>, vector<32x32xf32>,
    %76 = vector.extract_strided_slice %65 {offsets = [0, 5], sizes = [32, 32], strides = [1, 1]} : vector<32x48xf32> to vector<32x32xf32>
    %c160 = arith.constant 160 : index
    %c0_38 = arith.constant 0 : index
    %77 = vector.load %arg14[%c160, %c0_38] : memref<512x32xf32, #tpu.memory_space<vmem>>, vector<32x32xf32>
    tpu.vector_store %arg14[%c160, %c0_38], %76 {strides = array<i32>} : memref<512x32xf32, #tpu.memory_space<vmem>>, vector<32x32xf32>,
    %78 = vector.extract_strided_slice %65 {offsets = [0, 6], sizes = [32, 32], strides = [1, 1]} : vector<32x48xf32> to vector<32x32xf32>
    %c192 = arith.constant 192 : index
    %c0_39 = arith.constant 0 : index
    %79 = vector.load %arg14[%c192, %c0_39] : memref<512x32xf32, #tpu.memory_space<vmem>>, vector<32x32xf32>
    tpu.vector_store %arg14[%c192, %c0_39], %78 {strides = array<i32>} : memref<512x32xf32, #tpu.memory_space<vmem>>, vector<32x32xf32>,
    %80 = vector.extract_strided_slice %65 {offsets = [0, 7], sizes = [32, 32], strides = [1, 1]} : vector<32x48xf32> to vector<32x32xf32>
    %c224 = arith.constant 224 : index
    %c0_40 = arith.constant 0 : index
    %81 = vector.load %arg14[%c224, %c0_40] : memref<512x32xf32, #tpu.memory_space<vmem>>, vector<32x32xf32>
    tpu.vector_store %arg14[%c224, %c0_40], %80 {strides = array<i32>} : memref<512x32xf32, #tpu.memory_space<vmem>>, vector<32x32xf32>,
    %82 = vector.extract_strided_slice %65 {offsets = [0, 8], sizes = [32, 32], strides = [1, 1]} : vector<32x48xf32> to vector<32x32xf32>
    %c256 = arith.constant 256 : index
    %c0_41 = arith.constant 0 : index
    %83 = vector.load %arg14[%c256, %c0_41] : memref<512x32xf32, #tpu.memory_space<vmem>>, vector<32x32xf32>
    tpu.vector_store %arg14[%c256, %c0_41], %82 {strides = array<i32>} : memref<512x32xf32, #tpu.memory_space<vmem>>, vector<32x32xf32>,
    %84 = vector.extract_strided_slice %65 {offsets = [0, 9], sizes = [32, 32], strides = [1, 1]} : vector<32x48xf32> to vector<32x32xf32>
    %c288 = arith.constant 288 : index
    %c0_42 = arith.constant 0 : index
    %85 = vector.load %arg14[%c288, %c0_42] : memref<512x32xf32, #tpu.memory_space<vmem>>, vector<32x32xf32>
    tpu.vector_store %arg14[%c288, %c0_42], %84 {strides = array<i32>} : memref<512x32xf32, #tpu.memory_space<vmem>>, vector<32x32xf32>,
    %86 = vector.extract_strided_slice %65 {offsets = [0, 10], sizes = [32, 32], strides = [1, 1]} : vector<32x48xf32> to vector<32x32xf32>
    %c320 = arith.constant 320 : index
    %c0_43 = arith.constant 0 : index
    %87 = vector.load %arg14[%c320, %c0_43] : memref<512x32xf32, #tpu.memory_space<vmem>>, vector<32x32xf32>
    tpu.vector_store %arg14[%c320, %c0_43], %86 {strides = array<i32>} : memref<512x32xf32, #tpu.memory_space<vmem>>, vector<32x32xf32>,
    %88 = vector.extract_strided_slice %65 {offsets = [0, 11], sizes = [32, 32], strides = [1, 1]} : vector<32x48xf32> to vector<32x32xf32>
    %c352 = arith.constant 352 : index
    %c0_44 = arith.constant 0 : index
    %89 = vector.load %arg14[%c352, %c0_44] : memref<512x32xf32, #tpu.memory_space<vmem>>, vector<32x32xf32>
    tpu.vector_store %arg14[%c352, %c0_44], %88 {strides = array<i32>} : memref<512x32xf32, #tpu.memory_space<vmem>>, vector<32x32xf32>,
    %90 = vector.extract_strided_slice %65 {offsets = [0, 12], sizes = [32, 32], strides = [1, 1]} : vector<32x48xf32> to vector<32x32xf32>
    %c384 = arith.constant 384 : index
    %c0_45 = arith.constant 0 : index
    %91 = vector.load %arg14[%c384, %c0_45] : memref<512x32xf32, #tpu.memory_space<vmem>>, vector<32x32xf32>
    tpu.vector_store %arg14[%c384, %c0_45], %90 {strides = array<i32>} : memref<512x32xf32, #tpu.memory_space<vmem>>, vector<32x32xf32>,
    %92 = vector.extract_strided_slice %65 {offsets = [0, 13], sizes = [32, 32], strides = [1, 1]} : vector<32x48xf32> to vector<32x32xf32>
    %c416 = arith.constant 416 : index
    %c0_46 = arith.constant 0 : index
    %93 = vector.load %arg14[%c416, %c0_46] : memref<512x32xf32, #tpu.memory_space<vmem>>, vector<32x32xf32>
    tpu.vector_store %arg14[%c416, %c0_46], %92 {strides = array<i32>} : memref<512x32xf32, #tpu.memory_space<vmem>>, vector<32x32xf32>,
    %94 = vector.extract_strided_slice %65 {offsets = [0, 14], sizes = [32, 32], strides = [1, 1]} : vector<32x48xf32> to vector<32x32xf32>
    %c448 = arith.constant 448 : index
    %c0_47 = arith.constant 0 : index
    %95 = vector.load %arg14[%c448, %c0_47] : memref<512x32xf32, #tpu.memory_space<vmem>>, vector<32x32xf32>
    tpu.vector_store %arg14[%c448, %c0_47], %94 {strides = array<i32>} : memref<512x32xf32, #tpu.memory_space<vmem>>, vector<32x32xf32>,
    %96 = vector.extract_strided_slice %65 {offsets = [0, 15], sizes = [32, 32], strides = [1, 1]} : vector<32x48xf32> to vector<32x32xf32>
    %c480 = arith.constant 480 : index
    %c0_48 = arith.constant 0 : index
    %97 = vector.load %arg14[%c480, %c0_48] : memref<512x32xf32, #tpu.memory_space<vmem>>, vector<32x32xf32>
    tpu.vector_store %arg14[%c480, %c0_48], %96 {strides = array<i32>} : memref<512x32xf32, #tpu.memory_space<vmem>>, vector<32x32xf32>,
    %c0_49 = arith.constant 0 : index
    %c0_50 = arith.constant 0 : index
    %98 = vector.load %arg7[%c0_49, %c0_50] : memref<32x512xf32, #tpu.memory_space<vmem>>, vector<32x512xf32>
    %c0_51 = arith.constant 0 : index
    %c0_52 = arith.constant 0 : index
    %99 = vector.load %arg14[%c0_51, %c0_52] : memref<512x32xf32, #tpu.memory_space<vmem>>, vector<512x32xf32>
    %cst_53 = arith.constant dense<0.000000e+00> : vector<32x32xf32>
    %100 = tpu.matmul %98, %99, %cst_53 {dimension_numbers = #tpu.dot_dimension_numbers<[1], [0], [0], [1], [0, 0, 1, 1], [], []>} : vector<32x512xf32>, vector<512x32xf32>, vector<32x32xf32> -> vector<32x32xf32>
    %c0_54 = arith.constant 0 : index
    %c0_55 = arith.constant 0 : index
    %101 = vector.load %arg8[%c0_54, %c0_55] : memref<32x1xf32, #tpu.memory_space<vmem>>, vector<32x1xf32>
    %102 = vector.broadcast %101 : vector<32x1xf32> to vector<32x32xf32>
    %103 = arith.addf %100, %102 : vector<32x32xf32>
    %cst_56 = arith.constant 0.000000e+00 : f32
    %104 = vector.broadcast %cst_56 : f32 to vector<32x32xf32>
    %105 = arith.cmpf ogt, %103, %104 : vector<32x32xf32>
    %cst_57 = arith.constant 0.000000e+00 : f32
    %106 = vector.broadcast %cst_57 : f32 to vector<32x32xf32>
    %107 = arith.minimumf %103, %106 : vector<32x32xf32>
    %108 = math.exp %107 : vector<32x32xf32>
    %cst_58 = arith.constant 1.000000e+00 : f32
    %109 = vector.broadcast %cst_58 : f32 to vector<32x32xf32>
    %110 = arith.subf %108, %109 : vector<32x32xf32>
    %111 = arith.select %105, %103, %110 : vector<32x32xi1>, vector<32x32xf32>
    %c0_59 = arith.constant 0 : index
    %c0_60 = arith.constant 0 : index
    %112 = vector.load %arg11[%c0_59, %c0_60] : memref<4x4xf32, #tpu.memory_space<vmem>>, vector<4x4xf32>
    %c0_61 = arith.constant 0 : index
    %c0_62 = arith.constant 0 : index
    %113 = vector.load %arg12[%c0_61, %c0_62] : memref<2x2xf32, #tpu.memory_space<vmem>>, vector<2x2xf32>
    %cst_63 = arith.constant 0.000000e+00 : f32
    %114 = vector.broadcast %cst_63 : f32 to vector<32x4xf32>
    %c0_64 = arith.constant 0 : index
    %c0_65 = arith.constant 0 : index
    %c0_66 = arith.constant 0 : index
    %115 = vector.load %arg9[%c0_64, %c0_65, %c0_66] : memref<4x32x32xf32, #tpu.memory_space<vmem>>, vector<1x32x32xf32>
    %116 = vector.shape_cast %115 : vector<1x32x32xf32> to vector<32x32xf32>
    %117 = arith.mulf %116, %111 : vector<32x32xf32>
    %cst_67 = arith.constant dense<0.000000e+00> : vector<32xf32>
    %118 = vector.multi_reduction <add>, %117, %cst_67 [1] : vector<32x32xf32> to vector<32xf32>
    %119 = vector.shape_cast %118 : vector<32xf32> to vector<32x1xf32>
    %120 = vector.extract_strided_slice %112 {offsets = [0, 0], sizes = [1, 4], strides = [1, 1]} : vector<4x4xf32> to vector<1x4xf32>
    %121 = vector.broadcast %119 : vector<32x1xf32> to vector<32x4xf32>
    %122 = vector.broadcast %120 : vector<1x4xf32> to vector<32x4xf32>
    %123 = arith.mulf %121, %122 : vector<32x4xf32>
    %124 = arith.addf %114, %123 : vector<32x4xf32>
    %c1_68 = arith.constant 1 : index
    %c0_69 = arith.constant 0 : index
    %c0_70 = arith.constant 0 : index
    %125 = vector.load %arg9[%c1_68, %c0_69, %c0_70] : memref<4x32x32xf32, #tpu.memory_space<vmem>>, vector<1x32x32xf32>
    %126 = vector.shape_cast %125 : vector<1x32x32xf32> to vector<32x32xf32>
    %127 = arith.mulf %126, %111 : vector<32x32xf32>
    %cst_71 = arith.constant dense<0.000000e+00> : vector<32xf32>
    %128 = vector.multi_reduction <add>, %127, %cst_71 [1] : vector<32x32xf32> to vector<32xf32>
    %129 = vector.shape_cast %128 : vector<32xf32> to vector<32x1xf32>
    %130 = vector.extract_strided_slice %112 {offsets = [1, 0], sizes = [1, 4], strides = [1, 1]} : vector<4x4xf32> to vector<1x4xf32>
    %131 = vector.broadcast %129 : vector<32x1xf32> to vector<32x4xf32>
    %132 = vector.broadcast %130 : vector<1x4xf32> to vector<32x4xf32>
    %133 = arith.mulf %131, %132 : vector<32x4xf32>
    %134 = arith.addf %124, %133 : vector<32x4xf32>
    %c2_72 = arith.constant 2 : index
    %c0_73 = arith.constant 0 : index
    %c0_74 = arith.constant 0 : index
    %135 = vector.load %arg9[%c2_72, %c0_73, %c0_74] : memref<4x32x32xf32, #tpu.memory_space<vmem>>, vector<1x32x32xf32>
    %136 = vector.shape_cast %135 : vector<1x32x32xf32> to vector<32x32xf32>
    %137 = arith.mulf %136, %111 : vector<32x32xf32>
    %cst_75 = arith.constant dense<0.000000e+00> : vector<32xf32>
    %138 = vector.multi_reduction <add>, %137, %cst_75 [1] : vector<32x32xf32> to vector<32xf32>
    %139 = vector.shape_cast %138 : vector<32xf32> to vector<32x1xf32>
    %140 = vector.extract_strided_slice %112 {offsets = [2, 0], sizes = [1, 4], strides = [1, 1]} : vector<4x4xf32> to vector<1x4xf32>
    %141 = vector.broadcast %139 : vector<32x1xf32> to vector<32x4xf32>
    %142 = vector.broadcast %140 : vector<1x4xf32> to vector<32x4xf32>
    %143 = arith.mulf %141, %142 : vector<32x4xf32>
    %144 = arith.addf %134, %143 : vector<32x4xf32>
    %c3_76 = arith.constant 3 : index
    %c0_77 = arith.constant 0 : index
    %c0_78 = arith.constant 0 : index
    %145 = vector.load %arg9[%c3_76, %c0_77, %c0_78] : memref<4x32x32xf32, #tpu.memory_space<vmem>>, vector<1x32x32xf32>
    %146 = vector.shape_cast %145 : vector<1x32x32xf32> to vector<32x32xf32>
    %147 = arith.mulf %146, %111 : vector<32x32xf32>
    %cst_79 = arith.constant dense<0.000000e+00> : vector<32xf32>
    %148 = vector.multi_reduction <add>, %147, %cst_79 [1] : vector<32x32xf32> to vector<32xf32>
    %149 = vector.shape_cast %148 : vector<32xf32> to vector<32x1xf32>
    %150 = vector.extract_strided_slice %112 {offsets = [3, 0], sizes = [1, 4], strides = [1, 1]} : vector<4x4xf32> to vector<1x4xf32>
    %151 = vector.broadcast %149 : vector<32x1xf32> to vector<32x4xf32>
    %152 = vector.broadcast %150 : vector<1x4xf32> to vector<32x4xf32>
    %153 = arith.mulf %151, %152 : vector<32x4xf32>
    %154 = arith.addf %144, %153 : vector<32x4xf32>
    %cst_80 = arith.constant 0.000000e+00 : f32
    %155 = vector.broadcast %cst_80 : f32 to vector<2x4xf32>
    %156 = vector.extract_strided_slice %154 {offsets = [0, 0], sizes = [16, 4], strides = [1, 1]} : vector<32x4xf32> to vector<16x4xf32>
    %cst_81 = arith.constant dense<0.000000e+00> : vector<4xf32>
    %157 = vector.multi_reduction <add>, %156, %cst_81 [0] : vector<16x4xf32> to vector<4xf32>
    %158 = vector.shape_cast %157 : vector<4xf32> to vector<1x4xf32>
    %159 = vector.extract_strided_slice %113 {offsets = [0, 0], sizes = [2, 1], strides = [1, 1]} : vector<2x2xf32> to vector<2x1xf32>
    %160 = vector.broadcast %159 : vector<2x1xf32> to vector<2x4xf32>
    %161 = vector.broadcast %158 : vector<1x4xf32> to vector<2x4xf32>
    %162 = arith.mulf %160, %161 : vector<2x4xf32>
    %163 = arith.addf %155, %162 : vector<2x4xf32>
    %164 = vector.extract_strided_slice %154 {offsets = [16, 0], sizes = [16, 4], strides = [1, 1]} : vector<32x4xf32> to vector<16x4xf32>
    %cst_82 = arith.constant dense<0.000000e+00> : vector<4xf32>
    %165 = vector.multi_reduction <add>, %164, %cst_82 [0] : vector<16x4xf32> to vector<4xf32>
    %166 = vector.shape_cast %165 : vector<4xf32> to vector<1x4xf32>
    %167 = vector.extract_strided_slice %113 {offsets = [0, 1], sizes = [2, 1], strides = [1, 1]} : vector<2x2xf32> to vector<2x1xf32>
    %168 = vector.broadcast %167 : vector<2x1xf32> to vector<2x4xf32>
    %169 = vector.broadcast %166 : vector<1x4xf32> to vector<2x4xf32>
    %170 = arith.mulf %168, %169 : vector<2x4xf32>
    %171 = arith.addf %163, %170 : vector<2x4xf32>
    %c0_83 = arith.constant 0 : index
    %c0_84 = arith.constant 0 : index
    %172 = vector.load %arg10[%c0_83, %c0_84] : memref<1x4xf32, #tpu.memory_space<vmem>>, vector<1x4xf32>
    %173 = vector.broadcast %172 : vector<1x4xf32> to vector<2x4xf32>
    %174 = arith.addf %171, %173 : vector<2x4xf32>
    %cst_85 = arith.constant dense<0xFF800000> : vector<2xf32>
    %175 = vector.multi_reduction <maximumf>, %174, %cst_85 [1] : vector<2x4xf32> to vector<2xf32>
    %176 = vector.shape_cast %175 : vector<2xf32> to vector<2x1xf32>
    %177 = vector.broadcast %176 : vector<2x1xf32> to vector<2x4xf32>
    %178 = arith.subf %174, %177 : vector<2x4xf32>
    %179 = math.exp %178 : vector<2x4xf32>
    %cst_86 = arith.constant dense<0.000000e+00> : vector<2xf32>
    %180 = vector.multi_reduction <add>, %179, %cst_86 [1] : vector<2x4xf32> to vector<2xf32>
    %181 = vector.shape_cast %180 : vector<2xf32> to vector<2x1xf32>
    %182 = math.log %181 : vector<2x1xf32>
    %183 = vector.broadcast %182 : vector<2x1xf32> to vector<2x4xf32>
    %184 = arith.subf %178, %183 : vector<2x4xf32>
    %c0_87 = arith.constant 0 : index
    %c0_88 = arith.constant 0 : index
    %c0_89 = arith.constant 0 : index
    %185 = vector.load %arg13[%c0_87, %c0_88, %c0_89] : memref<1x2x4xf32, #tpu.memory_space<vmem>>, vector<1x2x4xf32>
    %186 = vector.shape_cast %185 : vector<1x2x4xf32> to vector<2x4xf32>
    %187 = vector.shape_cast %184 : vector<2x4xf32> to vector<1x2x4xf32>
    tpu.vector_store %arg13[%c0_87, %c0_88, %c0_89], %187 {strides = array<i32>} : memref<1x2x4xf32, #tpu.memory_space<vmem>>, vector<1x2x4xf32>,
    return
  }
  func.func @transform_0(%arg0: i32) -> (i32, i32, i32) {
    %c0_i32 = arith.constant 0 : i32
    %c0_i32_0 = arith.constant 0 : i32
    %c0_i32_1 = arith.constant 0 : i32
    return %arg0, %c0_i32, %c0_i32_0 : i32, i32, i32
  }
  func.func @transform_1(%arg0: i32) -> (i32, i32) {
    %c0_i32 = arith.constant 0 : i32
    %c0_i32_0 = arith.constant 0 : i32
    %c0_i32_1 = arith.constant 0 : i32
    return %c0_i32, %c0_i32_0 : i32, i32
  }
  func.func @transform_2(%arg0: i32) -> (i32, i32) {
    %c0_i32 = arith.constant 0 : i32
    %c0_i32_0 = arith.constant 0 : i32
    %c0_i32_1 = arith.constant 0 : i32
    return %c0_i32, %c0_i32_0 : i32, i32
  }
  func.func @transform_3(%arg0: i32) -> (i32, i32, i32) {
    %c0_i32 = arith.constant 0 : i32
    %c0_i32_0 = arith.constant 0 : i32
    %c0_i32_1 = arith.constant 0 : i32
    %c0_i32_2 = arith.constant 0 : i32
    return %c0_i32, %c0_i32_0, %c0_i32_1 : i32, i32, i32
  }
  func.func @transform_4(%arg0: i32) -> (i32, i32) {
    %c0_i32 = arith.constant 0 : i32
    %c0_i32_0 = arith.constant 0 : i32
    %c0_i32_1 = arith.constant 0 : i32
    return %c0_i32, %c0_i32_0 : i32, i32
  }
  func.func @transform_5(%arg0: i32) -> (i32, i32) {
    %c0_i32 = arith.constant 0 : i32
    %c0_i32_0 = arith.constant 0 : i32
    %c0_i32_1 = arith.constant 0 : i32
    return %c0_i32, %c0_i32_0 : i32, i32
  }
  func.func @transform_6(%arg0: i32) -> (i32, i32) {
    %c0_i32 = arith.constant 0 : i32
    %c0_i32_0 = arith.constant 0 : i32
    %c0_i32_1 = arith.constant 0 : i32
    return %c0_i32, %c0_i32_0 : i32, i32
  }
  func.func @transform_7(%arg0: i32) -> (i32, i32) {
    %c0_i32 = arith.constant 0 : i32
    %c0_i32_0 = arith.constant 0 : i32
    %c0_i32_1 = arith.constant 0 : i32
    return %c0_i32, %c0_i32_0 : i32, i32
  }
  func.func @transform_8(%arg0: i32) -> (i32, i32, i32) {
    %c0_i32 = arith.constant 0 : i32
    %c0_i32_0 = arith.constant 0 : i32
    %c0_i32_1 = arith.constant 0 : i32
    %c0_i32_2 = arith.constant 0 : i32
    return %c0_i32, %c0_i32_0, %c0_i32_1 : i32, i32, i32
  }
  func.func @transform_9(%arg0: i32) -> (i32, i32) {
    %c0_i32 = arith.constant 0 : i32
    %c0_i32_0 = arith.constant 0 : i32
    %c0_i32_1 = arith.constant 0 : i32
    return %c0_i32, %c0_i32_0 : i32, i32
  }
  func.func @transform_10(%arg0: i32) -> (i32, i32) {
    %c0_i32 = arith.constant 0 : i32
    %c0_i32_0 = arith.constant 0 : i32
    %c0_i32_1 = arith.constant 0 : i32
    return %c0_i32, %c0_i32_0 : i32, i32
  }
  func.func @transform_11(%arg0: i32) -> (i32, i32) {
    %c0_i32 = arith.constant 0 : i32
    %c0_i32_0 = arith.constant 0 : i32
    %c0_i32_1 = arith.constant 0 : i32
    return %c0_i32, %c0_i32_0 : i32, i32
  }
  func.func @transform_12(%arg0: i32) -> (i32, i32, i32) {
    %c0_i32 = arith.constant 0 : i32
    %c0_i32_0 = arith.constant 0 : i32
    %c0_i32_1 = arith.constant 0 : i32
    return %arg0, %c0_i32, %c0_i32_0 : i32, i32, i32
  }
}

</mosaic_0001>

<bundles_post_ra>
// kernel: eegnet_pallas.1
= control target key start
LH: loop header
LB: loop body
LE: loop exit
PB: predicated region body
PF: predicated region fallthrough
CT: control target
= control target key end

     0   :  { %17 = vsyncpa [#allocation4], 0  ;;  %s2844_s0 = inlined_call_operand.hbm [shape: f32[1,32,64], index: 0, kind: input, shape index: {}]   ;;  %s2845_s1 = inlined_call_operand.hbm [shape: f32[32,32], index: 1, kind: input, shape index: {}]   ;;  %s2846_s2 = inlined_call_operand.vmem [shape: f32[64,512], index: 2, kind: input, shape index: {}]   ;;  %s2847_s3 = inlined_call_operand.vmem [shape: f32[8,32,1], index: 3, kind: input, shape index: {}]   ;;  %s2848_s4 = inlined_call_operand.vmem [shape: f32[32,1], index: 4, kind: input, shape index: {}]   ;;  %s2849_s5 = inlined_call_operand.vmem [shape: f32[64,48], index: 5, kind: input, shape index: {}]   ;;  %s2850_s6 = inlined_call_operand.vmem [shape: f32[32,512], index: 6, kind: input, shape index: {}]   ;;  %s2851_s7 = inlined_call_operand.vmem [shape: f32[32,1], index: 7, kind: input, shape index: {}]   ;;  %s2852_s8 = inlined_call_operand.hbm [shape: f32[4,32,32], index: 8, kind: input, shape index: {}]   ;;  %s2853_s9 = inlined_call_operand.vmem [shape: f32[1,4], index: 9, kind: input, shape index: {}]   ;;  %s2854_s10 = inlined_call_operand.vmem [shape: f32[4,4], index: 10, kind: input, shape index: {}]   ;;  %s2855_s11 = inlined_call_operand.vmem [shape: f32[2,2], index: 11, kind: input, shape index: {}]   ;;  %s2856_s12 = inlined_call_operand.hbm [shape: f32[1,2,4], index: 12, kind: output, shape index: {}]  }
   0x1   :  { %18 = vsyncpa [#allocation7], 0 }
   0x2   :  { %19 = vsyncpa [#allocation5], 0  ;;  %s2100_s21 = smov [#allocation6]   ;;  %s2101_s23 = smov [#allocation3]  }
   0x3   :  { %s37_s22 = sshll.u32 %s2100_s21, 4  ;;  %s25_s24 = sshll.u32 %s2101_s23, 4  ;;  %s38_s22 = int_to_ptr.vmem [resolvable:$true] %s37_s22  ;;  %s2190_s24 = int_to_ptr.vmem [resolvable:$true] %s25_s24 }
   0x4   :  { %s2006_s27 = scalar_lea.hbm %s2845_s1, 512 }
   0x5   :  { %p2007_p0 = scmp.ne.s32.totalorder %s2845_s1, %s2006_s27  ;;  %p2010_p1 = scmp.lt.u32.totalorder %s2006_s27, %s2845_s1 }
   0x7   :  { %p2012_p2 = pnand %p2010_p1, %p2007_p0 }
   0x9   :  { %2015 = shalt.err (!%p2012_p2)
}
   0xa   :  { %s2016_s14 = scalar_lea.vmem %s38_s22, 512  ;;  %p2021_p4 = scmp.lt.s32.totalorder %s38_s22, %s38_s22 }
   0xb   :  { %p2017_p3 = scmp.ne.s32.totalorder %s38_s22, %s2016_s14  ;;  %p2022_p5 = scmp.lt.s32.totalorder %s2016_s14, %s2016_s14 }
   0xd   :  { %p2023_p6 = por %p2022_p5, %p2021_p4 }
   0xf   :  { %p2024_p7 = pnand %p2023_p6, %p2017_p3 }
  0x11   :  { %2027 = shalt.err (!%p2024_p7)
}
  0x12   :  { %s2102_s15 = smov 128   ;;  %s2103_s16 = smov 8  }
  0x13   :  { %43 = dma.hbm_to_vmem [thread:$0]  %s2845_s1, 512, %s38_s22, [#allocation7], %s2102_s15, %s2102_s15, %s2103_s16  }
  0x14   :  { %s2028_s21 = scalar_lea.hbm %s2844_s0, 512 }
  0x15   :  { %p2029_p8 = scmp.ne.s32.totalorder %s2844_s0, %s2028_s21  ;;  %p2032_p9 = scmp.lt.u32.totalorder %s2028_s21, %s2844_s0 }
  0x17   :  { %p2034_p10 = pnand %p2032_p9, %p2029_p8 }
  0x19   :  { %2037 = shalt.err (!%p2034_p10)
}
  0x1a   :  { %s2038_s28 = scalar_lea.vmem %s2190_s24, 512  ;;  %p2043_p12 = scmp.lt.s32.totalorder %s2190_s24, %s2190_s24 }
  0x1b   :  { %p2039_p11 = scmp.ne.s32.totalorder %s2190_s24, %s2038_s28  ;;  %p2044_p13 = scmp.lt.s32.totalorder %s2038_s28, %s2038_s28 }
  0x1d   :  { %p2045_p0 = por %p2044_p13, %p2043_p12 }
  0x1f   :  { %p2046_p1 = pnand %p2045_p0, %p2039_p11 }
  0x21   :  { %2049 = shalt.err (!%p2046_p1)
}
  0x22   :  { %31 = dma.hbm_to_vmem [thread:$0]  %s2844_s0, 512, %s2190_s24, [#allocation4], %s2102_s15, %s2102_s15, %s2103_s16  }
  0x23   :  { %s2104_s29 = smov [#allocation8]   ;;  %s2050_s17 = scalar_lea.hbm %s2852_s8, 2048 }
  0x24   :  { %s61_s30 = sshll.u32 %s2104_s29, 4  ;;  %p2051_p2 = scmp.ne.s32.totalorder %s2852_s8, %s2050_s17  ;;  %s62_s30 = int_to_ptr.vmem [resolvable:$true] %s61_s30 }
  0x25   :  { %p2054_p3 = scmp.lt.u32.totalorder %s2050_s17, %s2852_s8 }
  0x27   :  { %p2056_p4 = pnand %p2054_p3, %p2051_p2 }
  0x29   :  { %2059 = shalt.err (!%p2056_p4)
}
  0x2a   :  { %s2060_s23 = scalar_lea.vmem %s62_s30, 2048  ;;  %p2065_p6 = scmp.lt.s32.totalorder %s62_s30, %s62_s30 }
  0x2b   :  { %p2061_p5 = scmp.ne.s32.totalorder %s62_s30, %s2060_s23  ;;  %p2066_p7 = scmp.lt.s32.totalorder %s2060_s23, %s2060_s23 }
  0x2d   :  { %p2067_p8 = por %p2066_p7, %p2065_p6 }
  0x2f   :  { %p2068_p9 = pnand %p2067_p8, %p2061_p5 }
  0x31   :  { %2071 = shalt.err (!%p2068_p9)
}
  0x32   :  { %67 = dma.hbm_to_vmem [thread:$0]  %s2852_s8, 2048, %s62_s30, [#allocation7], %s2102_s15, %s2102_s15, %s2103_s16  }
  0x33   :  { %2094 = dma.done.wait [#allocation4], 512  }
  0x34   :  { %2095 = vsyncadd [#allocation4], 4294966784 }
  0x35   :  { %2096 = dma.done.wait [#allocation7], 2560  }
  0x36   :  { %2097 = vsyncadd [#allocation7], 4294964736  ;;  %vm91_vm0 = vcmask 261120   ;;  %v83_v0 = vld [vmem:[#allocation3] sm:$0xff]  ;;  %v84_v1 = vld [vmem:[#allocation3 + $0x8] sm:$0xff]  ;;  %v2105_v58 = vmov 0.0  }
  0x37   :  { %v85_v2 = vld [vmem:[#allocation3 + $0x10] sm:$0xff]  ;;  %v1838_v3 = vpack.c.bf16 %v84_v1, %v83_v0  ;;  %v86_v4 = vld [vmem:[#allocation3 + $0x18] sm:$0xff]  ;;  %v87_v5 = vld [vmem:[#allocation6] sm:$0xff]  ;;  %298 = vmatprep.mubr.f32.mxu1 %v2105_v58  ;;  %v2106_v59 = vmov 0   ;;  %vm221_vm1 = vcmask 523264   ;;  %s2109_s25 = smov 116  }
  0x38   :  { %v1842_v6 = vpack.c.bf16 %v86_v4, %v85_v2  ;;  %1810 = vmatprep.mubr.msk.f32.mxu0 %vm91_vm0, %v87_v5  ;;  %v190_v7 = vld [vmem:[%s2846_s2 + $0x8] sm:$0xff]  ;;  %v192_v9 = vld [vmem:[%s2846_s2 + $0x18] sm:$0xff]  ;;  %v189_v12 = vld [vmem:[%s2846_s2] sm:$0xff]  ;;  %1984 = vset.pattern.permute.xlu1 %v2106_v59  ;;  %s2110_s26 = smov 120   ;;  %s2111_s8 = smov 123   ;;  %vm1571_vm10 = vcmask 31744  }
  0x39   :  { %1839 = vmatprep.subr.bf16.mxu0 %v1838_v3  ;;  %v194_v8 = vld [vmem:[%s2846_s2 + $0x28] sm:$0xff]  ;;  %v196_v10 = vld [vmem:[%s2846_s2 + $0x38] sm:$0xff]  ;;  %v193_v13 = vld [vmem:[%s2846_s2 + $0x20] sm:$0xff]  ;;  %1983 = vset.pattern.permute.xlu0 %v2106_v59  ;;  %s2112_s15 = smov 127   ;;  %s2113_s16 = smov 115   ;;  %vm1611_vm11 = vcmask 25600  }
  0x3a   :  { %1841 = vmatpush3.bf16.msra.mxu0 %v1838_v3  ;;  %v1846_v11 = vpack.c.bf16 %v194_v8, %v190_v7  ;;  %v191_v14 = vld [vmem:[%s2846_s2 + $0x10] sm:$0xff]  ;;  %v1862_v15 = vpack.c.bf16 %v196_v10, %v192_v9  ;;  %v1848_v16 = vpack.c.bf16 %v193_v13, %v189_v12  ;;  %v198_v18 = vld [vmem:[%s2846_s2 + $0x48] sm:$0xff]  ;;  %v200_v21 = vld [vmem:[%s2846_s2 + $0x58] sm:$0xff]  ;;  %s2116_s27 = smov 126   ;;  %s2117_s28 = smov 114  }
  0x3b   :  { %1843 = vmatprep.subr.bf16.mxu0 %v1842_v6  ;;  %v195_v17 = vld [vmem:[%s2846_s2 + $0x30] sm:$0xff]  ;;  %v202_v19 = vld [vmem:[%s2846_s2 + $0x68] sm:$0xff]  ;;  %v204_v22 = vld [vmem:[%s2846_s2 + $0x78] sm:$0xff]  ;;  %s2118_s1 = smov 118   ;;  %s2120_s22 = smov 125  }
  0x3c   :  { %1847 = vmatprep.subr.bf16.mxu1 %v1846_v11  ;;  %v1850_v20 = vpack.c.bf16 %v202_v19, %v198_v18  ;;  %v197_v23 = vld [vmem:[%s2846_s2 + $0x40] sm:$0xff]  ;;  %v88_v24 = vld [vmem:[#allocation6 + $0x8] sm:$0xff]  ;;  %v89_v25 = vld [vmem:[#allocation6 + $0x10] sm:$0xff]  ;;  %v1864_v27 = vpack.c.bf16 %v195_v17, %v191_v14  ;;  %v1866_v32 = vpack.c.bf16 %v204_v22, %v200_v21  ;;  %s2121_s29 = smov 113   ;;  %s2122_s30 = smov 117  }
  0x3d   :  { %1849 = vmatpush1.bf16.msra.mxu1 %v1848_v16  ;;  %v201_v26 = vld [vmem:[%s2846_s2 + $0x60] sm:$0xff]  ;;  %v199_v29 = vld [vmem:[%s2846_s2 + $0x50] sm:$0xff]  ;;  %v206_v30 = vld [vmem:[%s2846_s2 + $0x88] sm:$0xff] }
  0x3e   :  { %1845 = vmatpush3.bf16.msra.mxu0 %v1842_v6  ;;  %1851 = vmatprep.subr.bf16.mxu1 %v1850_v20  ;;  %v1852_v28 = vpack.c.bf16 %v201_v26, %v197_v23  ;;  %v210_v31 = vld [vmem:[%s2846_s2 + $0xa8] sm:$0xff]  ;;  %v203_v33 = vld [vmem:[%s2846_s2 + $0x70] sm:$0xff]  ;;  %v205_v35 = vld [vmem:[%s2846_s2 + $0x80] sm:$0xff] }
  0x3f   :  { %1863 = vmatprep.subr.bf16.mxu0 %v1862_v15  ;;  %v1854_v34 = vpack.c.bf16 %v210_v31, %v206_v30  ;;  %v209_v36 = vld [vmem:[%s2846_s2 + $0xa0] sm:$0xff]  ;;  %v208_v37 = vld [vmem:[%s2846_s2 + $0x98] sm:$0xff]  ;;  %v214_v39 = vld [vmem:[%s2846_s2 + $0xc8] sm:$0xff]  ;;  %v1868_v43 = vpack.c.bf16 %v203_v33, %v199_v29 }
  0x40   :  { %v212_v38 = vld [vmem:[%s2846_s2 + $0xb8] sm:$0xff]  ;;  %v1856_v40 = vpack.c.bf16 %v209_v36, %v205_v35  ;;  %v218_v41 = vld [vmem:[%s2846_s2 + $0xe8] sm:$0xff]  ;;  %v213_v45 = vld [vmem:[%s2846_s2 + $0xc0] sm:$0xff] }
  0x41   :  { %1811 = vmatmul.mubr.msk.f32.vlgmr.msra.gmra.mrb[0].mxu0 %vm91_vm0, %v88_v24  ;;  %1853 = vmatpush1.bf16.msra.mxu1 %v1852_v28  ;;  %v90_v42 = vld [vmem:[#allocation6 + $0x18] sm:$0xff]  ;;  %v1858_v44 = vpack.c.bf16 %v218_v41, %v214_v39  ;;  %v217_v46 = vld [vmem:[%s2846_s2 + $0xe0] sm:$0xff]  ;;  %v1870_v47 = vpack.c.bf16 %v212_v38, %v208_v37  ;;  %v207_v48 = vld [vmem:[%s2846_s2 + $0x90] sm:$0xff] }
  0x42   :  { %1813 = vmatprep.mubr.msk.f32.mxu0 %vm91_vm0, %v89_v25  ;;  %1865 = vmatpush1.bf16.msra.mxu0 %v1864_v27  ;;  %v211_v49 = vld [vmem:[%s2846_s2 + $0xb0] sm:$0xff]  ;;  %v216_v50 = vld [vmem:[%s2846_s2 + $0xd8] sm:$0xff]  ;;  %v1860_v52 = vpack.c.bf16 %v217_v46, %v213_v45  ;;  %v1653_v61 = vld [vmem:[%s2847_s3 + $0x20] sm:$0xff] }
  0x43   :  { %1867 = vmatprep.subr.bf16.mxu0 %v1866_v32  ;;  %1855 = vmatprep.subr.bf16.mxu1 %v1854_v34  ;;  %v220_v51 = vld [vmem:[%s2846_s2 + $0xf8] sm:$0xff]  ;;  %v1872_v53 = vpack.c.bf16 %v211_v49, %v207_v48  ;;  %v215_v55 = vld [vmem:[%s2846_s2 + $0xd0] sm:$0xff]  ;;  %v1661_v62 = vld [vmem:[%s2847_s3 + $0x60] sm:$0xff] }
  0x44   :  { %v1874_v54 = vpack.c.bf16 %v220_v51, %v216_v50  ;;  %v219_v56 = vld [vmem:[%s2846_s2 + $0xf0] sm:$0xff]  ;;  %447 = vperm.xlu0 %1983, %v1653_v61   ;;  %v1654_v63 = vld [vmem:[%s2847_s3 + $0x28] sm:$0xff]  ;;  %v1656_v1 = vld [vmem:[%s2847_s3 + $0x38] sm:$0xff]  ;;  %s2115_s2 = smov 122  }
  0x45   :  { %1814 = vmatmul.mubr.msk.f32.gmra.mrb[2].mxu0 %vm91_vm0, %v90_v42  ;;  %1857 = vmatpush1.bf16.msra.mxu1 %v1856_v40  ;;  %v1876_v57 = vpack.c.bf16 %v219_v56, %v215_v55  ;;  %v1655_v60 = vld [vmem:[%s2847_s3 + $0x30] sm:$0xff]  ;;  %v1662_v0 = vld [vmem:[%s2847_s3 + $0x68] sm:$0xff]  ;;  %v1669_v2 = vld [vmem:[%s2847_s3 + $0xa0] sm:$0xff] }
  0x46   :  { %1869 = vmatpush1.bf16.msra.mxu0 %v1868_v43  ;;  %1859 = vmatprep.subr.bf16.mxu1 %v1858_v44  ;;  %v1663_v3 = vld [vmem:[%s2847_s3 + $0x70] sm:$0xff]  ;;  %v1670_v4 = vld [vmem:[%s2847_s3 + $0xa8] sm:$0xff]  ;;  %v1664_v5 = vld [vmem:[%s2847_s3 + $0x78] sm:$0xff] }
  0x47   :  { %1871 = vmatprep.subr.bf16.mxu0 %v1870_v47  ;;  %387 = vmatprep.mubr.f32.mxu0 %v2105_v58  ;;  %v1677_v6 = vld [vmem:[%s2847_s3 + $0xe0] sm:$0xff]  ;;  %v1671_v7 = vld [vmem:[%s2847_s3 + $0xb0] sm:$0xff]  ;;  %v1678_v8 = vld [vmem:[%s2847_s3 + $0xe8] sm:$0xff] }
  0x48   :  { %457 = vperm.xlu1 %1984, %v1655_v60   ;;  %452 = vperm.xlu0 %1983, %v1654_v63   ;;  %v1672_v9 = vld [vmem:[%s2847_s3 + $0xb8] sm:$0xff]  ;;  %v1679_v11 = vld [vmem:[%s2847_s3 + $0xf0] sm:$0xff]  ;;  %v413_v12 = vld [vmem:[%s2847_s3 + $0x8] sm:$0xff] }
  0x49   :  { %1861 = vmatpush1.bf16.msra.mxu1 %v1860_v52  ;;  %v1680_v10 = vld [vmem:[%s2847_s3 + $0xf8] sm:$0xff]  ;;  %v412_v13 = vld [vmem:[%s2847_s3] sm:$0xff]  ;;  %v1658_v14 = vld [vmem:[%s2847_s3 + $0x48] sm:$0xff] }
  0x4a   :  { %1873 = vmatpush1.bf16.msra.mxu0 %v1872_v53  ;;  %v1657_v15 = vld [vmem:[%s2847_s3 + $0x40] sm:$0xff]  ;;  %v415_v16 = vld [vmem:[%s2847_s3 + $0x18] sm:$0xff]  ;;  %v414_v17 = vld [vmem:[%s2847_s3 + $0x10] sm:$0xff] }
  0x4b   :  { %1875 = vmatprep.subr.bf16.mxu0 %v1874_v54  ;;  %v1665_v18 = vld [vmem:[%s2847_s3 + $0x80] sm:$0xff]  ;;  %v1659_v19 = vld [vmem:[%s2847_s3 + $0x50] sm:$0xff]  ;;  %v1666_v20 = vld [vmem:[%s2847_s3 + $0x88] sm:$0xff] }
  0x4c   :  { %529 = vperm.xlu1 %1984, %v1661_v62   ;;  %462 = vperm.xlu0 %1983, %v1656_v1   ;;  %v1660_v21 = vld [vmem:[%s2847_s3 + $0x58] sm:$0xff]  ;;  %v1673_v22 = vld [vmem:[%s2847_s3 + $0xc0] sm:$0xff]  ;;  %v1667_v23 = vld [vmem:[%s2847_s3 + $0x90] sm:$0xff] }
  0x4d   :  { %v1674_v24 = vld [vmem:[%s2847_s3 + $0xc8] sm:$0xff]  ;;  %v1668_v25 = vld [vmem:[%s2847_s3 + $0x98] sm:$0xff]  ;;  %v1675_v27 = vld [vmem:[%s2847_s3 + $0xd0] sm:$0xff] }
  0x4e   :  { %1877 = vmatpush1.bf16.msra.mxu0 %v1876_v57  ;;  %v1676_v26 = vld [vmem:[%s2847_s3 + $0xd8] sm:$0xff]  ;;  %v736_v28 = vld [vmem:[%s2848_s4 + $0x8] sm:$0xff]  ;;  %v735_v29 = vld [vmem:[%s2848_s4] sm:$0xff]  ;;  %s2107_s3 = smov 64  }
  0x4f   :  { %v737_v30 = vld [vmem:[%s2848_s4 + $0x10] sm:$0xff] }
  0x50   :  { %534 = vperm.xlu1 %1984, %v1662_v0   ;;  %539 = vperm.xlu0 %1983, %v1663_v3  }
  0x54   :  { %611 = vperm.xlu1 %1984, %v1669_v2   ;;  %544 = vperm.xlu0 %1983, %v1664_v5  }
  0x58   :  { %616 = vperm.xlu1 %1984, %v1670_v4   ;;  %621 = vperm.xlu0 %1983, %v1671_v7  }
  0x5c   :  { %693 = vperm.xlu1 %1984, %v1677_v6   ;;  %626 = vperm.xlu0 %1983, %v1672_v9  }
  0x60   :  { %698 = vperm.xlu1 %1984, %v1678_v8   ;;  %703 = vperm.xlu0 %1983, %v1679_v11  }
  0x64   :  { %708 = vperm.xlu1 %1984, %v1680_v10   ;;  %418 = vperm.xlu0 %1983, %v412_v13   ;;  %v738_v13 = vld [vmem:[%s2848_s4 + $0x18] sm:$0xff]  ;;  %s2119_s4 = smov 121  }
  0x68   :  { %423 = vperm.xlu1 %1984, %v413_v12   ;;  %496 = vperm.xlu0 %1983, %v1657_v15  }
  0x6c   :  { %501 = vperm.xlu1 %1984, %v1658_v14   ;;  %428 = vperm.xlu0 %1983, %v414_v17  }
  0x70   :  { %433 = vperm.xlu1 %1984, %v415_v16   ;;  %506 = vperm.xlu0 %1983, %v1659_v19  }
  0x74   :  { %578 = vperm.xlu1 %1984, %v1665_v18   ;;  %511 = vperm.xlu0 %1983, %v1660_v21   ;;  %v788_v21 = vld [vmem:[%s2849_s5 + $0x8] sm:$0xff] }
  0x78   :  { %583 = vperm.xlu1 %1984, %v1666_v20   ;;  %588 = vperm.xlu0 %1983, %v1667_v23   ;;  %v787_v20 = vld [vmem:[%s2849_s5] sm:$0xff]  ;;  %v789_v23 = vld [vmem:[%s2849_s5 + $0x10] sm:$0xff] }
  0x7c   :  { %660 = vperm.xlu1 %1984, %v1673_v22   ;;  %593 = vperm.xlu0 %1983, %v1668_v25   ;;  %v1878_v22 = vpack.c.bf16 %v788_v21, %v787_v20 }
  0x7e   :  { %1879 = vmatprep.subr.bf16.mxu1 %v1878_v22 }
  0x80   :  { %665 = vperm.xlu1 %1984, %v1674_v24   ;;  %670 = vperm.xlu0 %1983, %v1675_v27   ;;  %v790_v24 = vld [vmem:[%s2849_s5 + $0x18] sm:$0xff]  ;;  %v792_v27 = vld [vmem:[%s2849_s5 + $0x28] sm:$0xff] }
  0x81   :  { %v1882_v25 = vpack.c.bf16 %v790_v24, %v789_v23 }
  0x84   :  { %675 = vperm.xlu1 %1984, %v1676_v26   ;;  %741 = vperm.xlu0 %1983, %v735_v29   ;;  %v791_v26 = vld [vmem:[%s2849_s5 + $0x20] sm:$0xff]  ;;  %v793_v29 = vld [vmem:[%s2849_s5 + $0x30] sm:$0xff] }
  0x88   :  { %746 = vperm.xlu1 %1984, %v736_v28   ;;  %751 = vperm.xlu0 %1983, %v737_v30   ;;  %v1886_v28 = vpack.c.bf16 %v792_v27, %v791_v26  ;;  %v794_v30 = vld [vmem:[%s2849_s5 + $0x38] sm:$0xff]  ;;  %s2108_s5 = smov 124  }
  0xc3   :  { %v448_v37 = vpop.permute.xlu0 %447 }
  0xc7   :  { %v458_v35 = vpop.permute.xlu1 %457  ;;  %v453_v39 = vpop.permute.xlu0 %452 }
  0xcb   :  { %v530_v36 = vpop.permute.xlu1 %529  ;;  %v463_v41 = vpop.permute.xlu0 %462 }
  0xcf   :  { %v535_v38 = vpop.permute.xlu1 %534  ;;  %v540_v49 = vpop.permute.xlu0 %539 }
  0xd3   :  { %v612_v40 = vpop.permute.xlu1 %611  ;;  %v545_v62 = vpop.permute.xlu0 %544 }
  0xd7   :  { %v617_v42 = vpop.permute.xlu1 %616  ;;  %v622_v6 = vpop.permute.xlu0 %621 }
  0xdb   :  { %v694_v56 = vpop.permute.xlu1 %693  ;;  %v627_v10 = vpop.permute.xlu0 %626 }
  0xdf   :  { %v699_v14 = vpop.permute.xlu1 %698  ;;  %v704_v15 = vpop.permute.xlu0 %703 }
  0xe3   :  { %v709_v18 = vpop.permute.xlu1 %708 }
 0x114   :  { %v1812_v31 = vpop.f32.mrb[0].mxu0 }
 0x115   :  { %v170_v32 = vpop.f32.mrb[1].mxu0 }
 0x116   :  { %1645 = vmatmul.mubr.msk.f32.vlgmr.msra.gmra.mrb[0].mxu1 %vm221_vm1, %v170_v32  ;;  %1649 = vmatmul.mubr.msk.f32.vlgmr.msra.gmra.mrb[4].mxu0 %vm221_vm1, %v170_v32  ;;  %v419_v32 = vpop.permute.xlu0 %418 }
 0x117   :  { %304 = vmatprep.mubr.f32.mxu1 %v2105_v58  ;;  %393 = vmatprep.mubr.f32.mxu0 %v2105_v58 }
 0x118   :  { %v1815_v33 = vpop.f32.mrb[2].mxu0  ;;  %1881 = vmatpush3.bf16.msra.mxu1 %v1878_v22 }
 0x119   :  { %v180_v34 = vpop.f32.mrb[3].mxu0  ;;  %1883 = vmatprep.subr.bf16.mxu1 %v1882_v25 }
 0x11a   :  { %1646 = vmatmul.mubr.msk.f32.gmra.mrb[2].mxu1 %vm221_vm1, %v1812_v31  ;;  %1650 = vmatmul.mubr.msk.f32.gmra.mrb[6].mxu0 %vm221_vm1, %v1812_v31  ;;  %v1890_v31 = vpack.c.bf16 %v794_v30, %v793_v29 }
 0x11b   :  { %310 = vmatprep.mubr.f32.mxu1 %v2105_v58  ;;  %399 = vmatprep.mubr.f32.mxu0 %v2105_v58 }
 0x11c   :  { %1885 = vmatpush3.bf16.msra.mxu1 %v1882_v25 }
 0x11d   :  { %1887 = vmatprep.subr.bf16.mxu1 %v1886_v28 }
 0x11e   :  { %1647 = vmatmul.mubr.msk.f32.gmra.mrb[4].mxu1 %vm221_vm1, %v180_v34  ;;  %1651 = vmatmul.mubr.msk.f32.gmra.mrb[8].mxu0 %vm221_vm1, %v180_v34  ;;  %v424_v34 = vpop.permute.xlu1 %423 }
 0x11f   :  { %316 = vmatprep.mubr.f32.mxu1 %v2105_v58  ;;  %405 = vmatprep.mubr.f32.mxu0 %v2105_v58 }
 0x120   :  { %1889 = vmatpush3.bf16.msra.mxu1 %v1886_v28 }
 0x121   :  { %1891 = vmatprep.subr.bf16.mxu1 %v1890_v31 }
 0x122   :  { %1648 = vmatmul.mubr.msk.f32.gmra.mrb[6].mxu1 %vm221_vm1, %v1815_v33  ;;  %1652 = vmatmul.mubr.msk.f32.gmra.mrb[10].mxu0 %vm221_vm1, %v1815_v33  ;;  %v497_v33 = vpop.permute.xlu0 %496 }
 0x124   :  { %1893 = vmatpush3.bf16.msra.mxu1 %v1890_v31 }
 0x1e9   :  { %v2463_v43 = vpop.f32.mrb[0].mxu1  ;;  %v2465_v44 = vpop.f32.mrb[4].mxu0 }
 0x1ea   :  { %v465_v45 = vmul.f32 %v448_v37, %v2463_v43  ;;  %v2468_v46 = vpop.f32.mrb[1].mxu1  ;;  %v2470_v47 = vpop.f32.mrb[5].mxu0  ;;  %v629_v52 = vmul.f32 %v612_v40, %v2465_v44 }
 0x1eb   :  { %v547_v48 = vmul.f32 %v530_v36, %v2468_v46  ;;  %v711_v59 = vmul.f32 %v694_v56, %v2470_v47  ;;  %v502_v36 = vpop.permute.xlu1 %501 }
 0x1ec   :  { %473 = vrot.lane.b32.xlu0 %v465_v45, %s2107_s3 }
 0x1ed   :  { %555 = vrot.lane.b32.xlu1 %v547_v48, %s2107_s3  ;;  %v2475_v50 = vpop.f32.mrb[2].mxu1  ;;  %v2477_v51 = vpop.f32.mrb[6].mxu0 }
 0x1ee   :  { %v466_v53 = vmul.f32 %v453_v39, %v2475_v50  ;;  %v2481_v54 = vpop.f32.mrb[3].mxu1  ;;  %v2483_v55 = vpop.f32.mrb[7].mxu0  ;;  %v630_v63 = vmul.f32 %v617_v42, %v2477_v51 }
 0x1ef   :  { %v548_v5 = vmul.f32 %v535_v38, %v2481_v54  ;;  %v712_v17 = vmul.f32 %v699_v14, %v2483_v55  ;;  %v434_v38 = vpop.permute.xlu1 %433  ;;  %v515_v14 = vmul.f32 %v502_v36, %v2481_v54 }
 0x1f0   :  { %637 = vrot.lane.b32.xlu0 %v629_v52, %s2107_s3 }
 0x1f1   :  { %475 = vrot.lane.b32.xlu1 %v466_v53, %s2107_s3  ;;  %v2487_v57 = vpop.f32.mrb[4].mxu1  ;;  %v2489_v58 = vpop.f32.mrb[8].mxu0 }
 0x1f2   :  { %v2492_v60 = vpop.f32.mrb[5].mxu1  ;;  %v2494_v61 = vpop.f32.mrb[9].mxu0  ;;  %v467_v2 = vmul.f32 %v458_v35, %v2487_v57  ;;  %v631_v8 = vmul.f32 %v622_v6, %v2489_v58 }
 0x1f3   :  { %v549_v11 = vmul.f32 %v540_v49, %v2492_v60  ;;  %v713_v16 = vmul.f32 %v704_v15, %v2494_v61  ;;  %v429_v35 = vpop.permute.xlu0 %428  ;;  %v579_v40 = vpop.permute.xlu1 %578 }
 0x1f4   :  { %719 = vrot.lane.b32.xlu0 %v711_v59, %s2107_s3  ;;  %v438_v20 = vmul.f32 %v429_v35, %v2487_v57 }
 0x1f5   :  { %639 = vrot.lane.b32.xlu1 %v630_v63, %s2107_s3  ;;  %v2499_v0 = vpop.f32.mrb[6].mxu1  ;;  %v2501_v1 = vpop.f32.mrb[10].mxu0  ;;  %v436_v63 = vmul.f32 %v419_v32, %v2463_v43 }
 0x1f6   :  { %v2504_v3 = vpop.f32.mrb[7].mxu1  ;;  %v2506_v4 = vpop.f32.mrb[11].mxu0  ;;  %v468_v7 = vmul.f32 %v463_v41, %v2499_v0  ;;  %v632_v12 = vmul.f32 %v627_v10, %v2501_v1  ;;  %v439_v26 = vmul.f32 %v434_v38, %v2499_v0 }
 0x1f7   :  { %v550_v9 = vmul.f32 %v545_v62, %v2504_v3  ;;  %v714_v19 = vmul.f32 %v709_v18, %v2506_v4  ;;  %v507_v37 = vpop.permute.xlu0 %506  ;;  %v584_v42 = vpop.permute.xlu1 %583 }
 0x1f8   :  { %477 = vrot.lane.b32.xlu0 %v467_v2, %s2107_s3  ;;  %v597_v25 = vmul.f32 %v584_v42, %v2477_v51 }
 0x1f9   :  { %557 = vrot.lane.b32.xlu1 %v548_v5, %s2107_s3  ;;  %v514_v5 = vmul.f32 %v497_v33, %v2468_v46 }
 0x1fb   :  { %v512_v39 = vpop.permute.xlu0 %511  ;;  %v661_v48 = vpop.permute.xlu1 %660 }
 0x1fc   :  { %479 = vrot.lane.b32.xlu0 %v468_v7, %s2107_s3  ;;  %v678_v43 = vmul.f32 %v661_v48, %v2470_v47  ;;  %v517_v30 = vmul.f32 %v512_v39, %v2504_v3 }
 0x1fd   :  { %641 = vrot.lane.b32.xlu1 %v631_v8, %s2107_s3 }
 0x1ff   :  { %v589_v41 = vpop.permute.xlu0 %588  ;;  %v666_v52 = vpop.permute.xlu1 %665 }
 0x200   :  { %561 = vrot.lane.b32.xlu0 %v550_v9, %s2107_s3  ;;  %v437_v9 = vmul.f32 %v424_v34, %v2475_v50  ;;  %v516_v50 = vmul.f32 %v507_v37, %v2492_v60  ;;  %v679_v33 = vmul.f32 %v666_v52, %v2483_v55 }
 0x201   :  { %559 = vrot.lane.b32.xlu1 %v549_v11, %s2107_s3  ;;  %v596_v11 = vmul.f32 %v579_v40, %v2465_v44  ;;  %v598_v40 = vmul.f32 %v589_v41, %v2489_v58 }
 0x203   :  { %v594_v45 = vpop.permute.xlu0 %593  ;;  %v676_v56 = vpop.permute.xlu1 %675 }
 0x204   :  { %643 = vrot.lane.b32.xlu0 %v632_v12, %s2107_s3  ;;  %v599_v51 = vmul.f32 %v594_v45, %v2501_v1 }
 0x205   :  { %756 = vperm.xlu1 %1984, %v738_v13  }
 0x207   :  { %v671_v49 = vpop.permute.xlu0 %670  ;;  %v2556_v62 = vpop.permute.xlu1 %746 }
 0x208   :  { %723 = vrot.lane.b32.xlu0 %v713_v16, %s2107_s3  ;;  %v680_v55 = vmul.f32 %v671_v49, %v2494_v61 }
 0x209   :  { %721 = vrot.lane.b32.xlu1 %v712_v17, %s2107_s3 }
 0x20b   :  { %v742_v53 = vpop.permute.xlu0 %741 }
 0x20d   :  { %725 = vrot.lane.b32.xlu1 %v714_v19, %s2107_s3  ;;  %s2114_s3 = smov 119  }
 0x20f   :  { %v2554_v59 = vpop.permute.xlu0 %751 }
 0x25e   :  { %v474_v2 = vpop.permute.xlu0 %473 }
 0x25f   :  { %v485_v6 = vadd.f32 %v474_v2, %v436_v63  ;;  %v556_v7 = vpop.permute.xlu1 %555 }
 0x261   :  { %v518_v8 = vadd.f32 %v514_v5, %v485_v6 }
 0x262   :  { %v638_v10 = vpop.permute.xlu0 %637 }
 0x263   :  { %v567_v12 = vadd.f32 %v556_v7, %v518_v8  ;;  %v476_v13 = vpop.permute.xlu1 %475 }
 0x264   :  { %v486_v15 = vadd.f32 %v476_v13, %v437_v9 }
 0x265   :  { %v600_v16 = vadd.f32 %v596_v11, %v567_v12 }
 0x266   :  { %v720_v17 = vpop.permute.xlu0 %719  ;;  %v519_v18 = vadd.f32 %v515_v14, %v486_v15 }
 0x267   :  { %v649_v19 = vadd.f32 %v638_v10, %v600_v16  ;;  %v640_v46 = vpop.permute.xlu1 %639 }
 0x269   :  { %v682_v21 = vadd.f32 %v678_v43, %v649_v19 }
 0x26a   :  { %v478_v22 = vpop.permute.xlu0 %477 }
 0x26b   :  { %v731_v23 = vadd.f32 %v720_v17, %v682_v21  ;;  %v487_v44 = vadd.f32 %v478_v22, %v438_v20  ;;  %v558_v24 = vpop.permute.xlu1 %557 }
 0x26c   :  { %v568_v54 = vadd.f32 %v558_v24, %v519_v18  ;;  %v1141_v24 = vld [vmem:[%s2850_s6 + $0x8] sm:$0xff] }
 0x26d   :  { %v759_v27 = vadd.f32 %v742_v53, %v731_v23  ;;  %v520_v28 = vadd.f32 %v516_v50, %v487_v44  ;;  %v681_v53 = vmul.f32 %v676_v56, %v2506_v4  ;;  %1308 = vmatprep.mubr.f32.mxu0 %v1141_v24 }
 0x26e   :  { %v601_v29 = vadd.f32 %v597_v25, %v568_v54  ;;  %v480_v47 = vpop.permute.xlu0 %479  ;;  %v1143_v54 = vld [vmem:[%s2850_s6 + $0x18] sm:$0xff] }
 0x26f   :  { %v767_v31 = vmin.f32 %v759_v27, 0.0  ;;  %v488_v57 = vadd.f32 %v480_v47, %v439_v26  ;;  %v642_v32 = vpop.permute.xlu1 %641  ;;  %vm763_vm2 = vcmp.gt.f32.partialorder %v759_v27, 0.0 }
 0x270   :  { %v650_v60 = vadd.f32 %v640_v46, %v601_v29  ;;  %v1220_v29 = vld [vmem:[%s2851_s7] sm:$0xff] }
 0x271   :  { %v771_v34 = vmul.f32 1.442695, %v767_v31  ;;  %v521_v35 = vadd.f32 %v517_v30, %v488_v57  ;;  %v1223_v30 = vld [vmem:[%s2851_s7 + $0x18] sm:$0xff]  ;;  %v1222_v31 = vld [vmem:[%s2851_s7 + $0x10] sm:$0xff] }
 0x272   :  { %v562_v36 = vpop.permute.xlu0 %561  ;;  %v683_v37 = vadd.f32 %v679_v33, %v650_v60 }
 0x273   :  { %1986 = vpow2.f32 %v771_v34  ;;  %v570_v0 = vadd.f32 %v562_v36, %v521_v35  ;;  %v560_v38 = vpop.permute.xlu1 %559 }
 0x274   :  { %v569_v42 = vadd.f32 %v560_v38, %v520_v28 }
 0x275   :  { %v603_v48 = vadd.f32 %v599_v51, %v570_v0 }
 0x276   :  { %v602_v3 = vadd.f32 %v598_v40, %v569_v42  ;;  %v644_v39 = vpop.permute.xlu0 %643 }
 0x277   :  { %v652_v63 = vadd.f32 %v644_v39, %v603_v48 }
 0x278   :  { %v651_v52 = vadd.f32 %v642_v32, %v602_v3 }
 0x279   :  { %v685_v2 = vadd.f32 %v681_v53, %v652_v63 }
 0x27a   :  { %v684_v5 = vadd.f32 %v680_v55, %v651_v52  ;;  %v724_v6 = vpop.permute.xlu0 %723 }
 0x27c   :  { %v733_v1 = vadd.f32 %v724_v6, %v684_v5 }
 0x27d   :  { %v1987_v7 = vpop.eup %1986 }
 0x27e   :  { %v1681_v45 = vadd.f32 -1.0, %v1987_v7  ;;  %v761_v58 = vadd.f32 %v2554_v59, %v733_v1 }
 0x280   :  { %v783_v8 = vsel %vm763_vm2, %v759_v27, %v1681_v45  ;;  %v769_v9 = vmin.f32 %v761_v58, 0.0  ;;  %vm765_vm4 = vcmp.gt.f32.partialorder %v761_v58, 0.0  ;;  %v1221_v27 = vld [vmem:[%s2851_s7 + $0x8] sm:$0xff] }
 0x281   :  { %1832 = vmatprep.mubr.msk.f32.mxu1 %vm221_vm1, %v783_v8 }
 0x282   :  { %v775_v56 = vmul.f32 1.442695, %v769_v9 }
 0x284   :  { %v757_v41 = vpop.permute.xlu1 %756  ;;  %1988 = vpow2.f32 %v775_v56 }
 0x288   :  { %v722_v10 = vpop.permute.xlu1 %721 }
 0x289   :  { %v732_v4 = vadd.f32 %v722_v10, %v683_v37 }
 0x28b   :  { %v760_v61 = vadd.f32 %v2556_v62, %v732_v4 }
 0x28c   :  { %v726_v49 = vpop.permute.xlu1 %725 }
 0x28d   :  { %v768_v11 = vmin.f32 %v760_v61, 0.0  ;;  %v734_v12 = vadd.f32 %v726_v49, %v685_v2  ;;  %vm764_vm3 = vcmp.gt.f32.partialorder %v760_v61, 0.0 }
 0x28e   :  { %v1989_v17 = vpop.eup %1988 }
 0x28f   :  { %v773_v13 = vmul.f32 1.442695, %v768_v11  ;;  %v762_v14 = vadd.f32 %v757_v41, %v734_v12  ;;  %v1683_v59 = vadd.f32 -1.0, %v1989_v17 }
 0x291   :  { %1990 = vpow2.f32 %v773_v13  ;;  %v770_v15 = vmin.f32 %v762_v14, 0.0  ;;  %v785_v62 = vsel %vm765_vm4, %v761_v58, %v1683_v59  ;;  %vm766_vm5 = vcmp.gt.f32.partialorder %v762_v14, 0.0 }
 0x293   :  { %v777_v16 = vmul.f32 1.442695, %v770_v15 }
 0x295   :  { %1992 = vpow2.f32 %v777_v16 }
 0x29b   :  { %v1991_v18 = vpop.eup %1990 }
 0x29c   :  { %v1682_v43 = vadd.f32 -1.0, %v1991_v18 }
 0x29e   :  { %v784_v19 = vsel %vm764_vm3, %v760_v61, %v1682_v43 }
 0x29f   :  { %v1993_v46 = vpop.eup %1992  ;;  %1833 = vmatmul.mubr.msk.f32.vlgmr.msra.gmra.mrb[8].mxu1 %vm221_vm1, %v784_v19 }
 0x2a0   :  { %1835 = vmatprep.mubr.msk.f32.mxu1 %vm221_vm1, %v785_v62  ;;  %v1684_v20 = vadd.f32 -1.0, %v1993_v46 }
 0x2a2   :  { %v786_v21 = vsel %vm766_vm5, %v762_v14, %v1684_v20 }
 0x2a3   :  { %1836 = vmatmul.mubr.msk.f32.gmra.mrb[10].mxu1 %vm221_vm1, %v786_v21 }
 0x2a4   :  { %1393 = vmatprep.mubr.f32.mxu1 %v1143_v54 }
 0x372   :  { %v1834_v22 = vpop.f32.mrb[8].mxu1 }
 0x373   :  { %893 = vst.msk [vmem:[#allocation2 + $0x8] sm:$0xff] %vm91_vm0, %v1834_v22  ;;  %950 = vrot.lane.b32.xlu1 %v1834_v22, %s2108_s5  ;;  %v873_v50 = vpop.f32.mrb[9].mxu1 }
 0x374   :  { %892 = vst.msk [vmem:[#allocation2] sm:$0xff] %vm91_vm0, %v873_v50  ;;  %948 = vrot.lane.b32.xlu0 %v873_v50, %s2108_s5 }
 0x376   :  { %v2584_v23 = vpop.f32.mrb[10].mxu1 }
 0x377   :  { %895 = vst.msk [vmem:[#allocation2 + $0x18] sm:$0xff] %vm91_vm0, %v2584_v23  ;;  %1078 = vrot.lane.b32.xlu1 %v1834_v22, %s2109_s25  ;;  %v2589_v44 = vpop.f32.mrb[11].mxu1 }
 0x378   :  { %894 = vst.msk [vmem:[#allocation2 + $0x10] sm:$0xff] %vm91_vm0, %v2589_v44  ;;  %1076 = vrot.lane.b32.xlu0 %v873_v50, %s2109_s25 }
 0x37a   :  { %v1157_v60 = vld [vmem:[#allocation2 + $0x8] sm:$0xff] }
 0x37b   :  { %1014 = vrot.lane.b32.xlu1 %v1834_v22, %s2110_s26  ;;  %v1156_v33 = vld [vmem:[#allocation2] sm:$0xff] }
 0x37c   :  { %1012 = vrot.lane.b32.xlu0 %v873_v50, %s2110_s26  ;;  %v1896_v37 = vpack.c.bf16 %v1157_v60, %v1156_v33 }
 0x37e   :  { %v1159_v19 = vld [vmem:[#allocation2 + $0x18] sm:$0xff] }
 0x37f   :  { %966 = vrot.lane.b32.xlu1 %v1834_v22, %s2111_s8  ;;  %v1158_v43 = vld [vmem:[#allocation2 + $0x10] sm:$0xff] }
 0x380   :  { %964 = vrot.lane.b32.xlu0 %v873_v50, %s2111_s8 }
 0x383   :  { %902 = vrot.lane.b32.xlu1 %v1834_v22, %s2112_s15 }
 0x384   :  { %900 = vrot.lane.b32.xlu0 %v873_v50, %s2112_s15 }
 0x387   :  { %1094 = vrot.lane.b32.xlu1 %v1834_v22, %s2113_s16 }
 0x388   :  { %1092 = vrot.lane.b32.xlu0 %v873_v50, %s2113_s16 }
 0x38b   :  { %1030 = vrot.lane.b32.xlu1 %v1834_v22, %s2114_s3 }
 0x38c   :  { %1028 = vrot.lane.b32.xlu0 %v873_v50, %s2114_s3 }
 0x38f   :  { %982 = vrot.lane.b32.xlu1 %v1834_v22, %s2115_s2 }
 0x390   :  { %980 = vrot.lane.b32.xlu0 %v873_v50, %s2115_s2 }
 0x393   :  { %918 = vrot.lane.b32.xlu1 %v1834_v22, %s2116_s27 }
 0x394   :  { %916 = vrot.lane.b32.xlu0 %v873_v50, %s2116_s27 }
 0x397   :  { %1110 = vrot.lane.b32.xlu1 %v1834_v22, %s2117_s28 }
 0x398   :  { %1108 = vrot.lane.b32.xlu0 %v873_v50, %s2117_s28 }
 0x39b   :  { %1046 = vrot.lane.b32.xlu1 %v1834_v22, %s2118_s1 }
 0x39c   :  { %1044 = vrot.lane.b32.xlu0 %v873_v50, %s2118_s1 }
 0x39f   :  { %998 = vrot.lane.b32.xlu1 %v1834_v22, %s2119_s4 }
 0x3a0   :  { %996 = vrot.lane.b32.xlu0 %v873_v50, %s2119_s4 }
 0x3a3   :  { %934 = vrot.lane.b32.xlu1 %v1834_v22, %s2120_s22 }
 0x3a4   :  { %932 = vrot.lane.b32.xlu0 %v873_v50, %s2120_s22 }
 0x3a7   :  { %1126 = vrot.lane.b32.xlu1 %v1834_v22, %s2121_s29 }
 0x3a8   :  { %1124 = vrot.lane.b32.xlu0 %v873_v50, %s2121_s29 }
 0x3ab   :  { %1062 = vrot.lane.b32.xlu1 %v1834_v22, %s2122_s30 }
 0x3ac   :  { %1060 = vrot.lane.b32.xlu0 %v873_v50, %s2122_s30  ;;  %v1900_v50 = vpack.c.bf16 %v1159_v19, %v1158_v43 }
 0x3af   :  { %954 = vrot.lane.b32.xlu1 %v2584_v23, %s2108_s5 }
 0x3b0   :  { %952 = vrot.lane.b32.xlu0 %v2589_v44, %s2108_s5 }
 0x3b3   :  { %1082 = vrot.lane.b32.xlu1 %v2584_v23, %s2109_s25 }
 0x3b4   :  { %1080 = vrot.lane.b32.xlu0 %v2589_v44, %s2109_s25 }
 0x3b7   :  { %1018 = vrot.lane.b32.xlu1 %v2584_v23, %s2110_s26 }
 0x3b8   :  { %1016 = vrot.lane.b32.xlu0 %v2589_v44, %s2110_s26 }
 0x3bb   :  { %970 = vrot.lane.b32.xlu1 %v2584_v23, %s2111_s8 }
 0x3bc   :  { %968 = vrot.lane.b32.xlu0 %v2589_v44, %s2111_s8 }
 0x3bf   :  { %906 = vrot.lane.b32.xlu1 %v2584_v23, %s2112_s15 }
 0x3c0   :  { %904 = vrot.lane.b32.xlu0 %v2589_v44, %s2112_s15 }
 0x3c3   :  { %1098 = vrot.lane.b32.xlu1 %v2584_v23, %s2113_s16 }
 0x3c4   :  { %1096 = vrot.lane.b32.xlu0 %v2589_v44, %s2113_s16 }
 0x3c7   :  { %1034 = vrot.lane.b32.xlu1 %v2584_v23, %s2114_s3 }
 0x3c8   :  { %1032 = vrot.lane.b32.xlu0 %v2589_v44, %s2114_s3  ;;  %s2124_s3 = smov [#allocation9]  }
 0x3cb   :  { %986 = vrot.lane.b32.xlu1 %v2584_v23, %s2115_s2 }
 0x3cc   :  { %984 = vrot.lane.b32.xlu0 %v2589_v44, %s2115_s2  ;;  %s1631_s2 = sshll.u32 %s2124_s3, 4  ;;  %s1632_s2 = int_to_ptr.vmem [resolvable:$true] %s1631_s2 }
 0x3cd   :  { %p2077_p11 = scmp.lt.s32.totalorder %s1632_s2, %s1632_s2 }
 0x3cf   :  { %922 = vrot.lane.b32.xlu1 %v2584_v23, %s2116_s27 }
 0x3d0   :  { %920 = vrot.lane.b32.xlu0 %v2589_v44, %s2116_s27 }
 0x3d3   :  { %1114 = vrot.lane.b32.xlu1 %v2584_v23, %s2117_s28 }
 0x3d4   :  { %1112 = vrot.lane.b32.xlu0 %v2589_v44, %s2117_s28 }
 0x3d7   :  { %1050 = vrot.lane.b32.xlu1 %v2584_v23, %s2118_s1 }
 0x3d8   :  { %1048 = vrot.lane.b32.xlu0 %v2589_v44, %s2118_s1 }
 0x3db   :  { %1002 = vrot.lane.b32.xlu1 %v2584_v23, %s2119_s4 }
 0x3dc   :  { %1000 = vrot.lane.b32.xlu0 %v2589_v44, %s2119_s4 }
 0x3df   :  { %938 = vrot.lane.b32.xlu1 %v2584_v23, %s2120_s22 }
 0x3e0   :  { %936 = vrot.lane.b32.xlu0 %v2589_v44, %s2120_s22 }
 0x3e3   :  { %1130 = vrot.lane.b32.xlu1 %v2584_v23, %s2121_s29 }
 0x3e4   :  { %1128 = vrot.lane.b32.xlu0 %v2589_v44, %s2121_s29 }
 0x3e5   :  { %v951_v25 = vpop.permute.xlu1 %950 }
 0x3e6   :  { %961 = vst.msk [vmem:[#allocation2 + $0x88] sm:$0xff] %vm91_vm0, %v951_v25  ;;  %v949_v26 = vpop.permute.xlu0 %948 }
 0x3e7   :  { %960 = vst.msk [vmem:[#allocation2 + $0x80] sm:$0xff] %vm91_vm0, %v949_v26  ;;  %1066 = vrot.lane.b32.xlu1 %v2584_v23, %s2122_s30 }
 0x3e8   :  { %1064 = vrot.lane.b32.xlu0 %v2589_v44, %s2122_s30 }
 0x3e9   :  { %v1079_v28 = vpop.permute.xlu1 %1078 }
 0x3ea   :  { %1089 = vst.msk [vmem:[#allocation2 + $0x188] sm:$0xff] %vm91_vm0, %v1079_v28  ;;  %v1077_v47 = vpop.permute.xlu0 %1076 }
 0x3eb   :  { %1088 = vst.msk [vmem:[#allocation2 + $0x180] sm:$0xff] %vm91_vm0, %v1077_v47  ;;  %1231 = vperm.xlu1 %1984, %v1221_v27  }
 0x3ec   :  { %1226 = vperm.xlu0 %1983, %v1220_v29  }
 0x3ed   :  { %v1015_v57 = vpop.permute.xlu1 %1014  ;;  %v1173_v32 = vld [vmem:[#allocation2 + $0x88] sm:$0xff] }
 0x3ee   :  { %1025 = vst.msk [vmem:[#allocation2 + $0x108] sm:$0xff] %vm91_vm0, %v1015_v57  ;;  %v1013_v34 = vpop.permute.xlu0 %1012  ;;  %v1172_v35 = vld [vmem:[#allocation2 + $0x80] sm:$0xff] }
 0x3ef   :  { %1024 = vst.msk [vmem:[#allocation2 + $0x100] sm:$0xff] %vm91_vm0, %v1013_v34  ;;  %1241 = vperm.xlu1 %1984, %v1223_v30   ;;  %v1894_v36 = vpack.c.bf16 %v1173_v32, %v1172_v35 }
 0x3f0   :  { %1236 = vperm.xlu0 %1983, %v1222_v31  }
 0x3f1   :  { %v967_v51 = vpop.permute.xlu1 %966  ;;  %1895 = vmatprep.subr.bf16.mxu0 %v1894_v36  ;;  %v1205_v0 = vld [vmem:[#allocation2 + $0x188] sm:$0xff] }
 0x3f2   :  { %977 = vst.msk [vmem:[#allocation2 + $0xa8] sm:$0xff] %vm91_vm0, %v967_v51  ;;  %1897 = vmatpush3.bf16.msra.mxu0 %v1896_v37  ;;  %v965_v38 = vpop.permute.xlu0 %964  ;;  %v1204_v40 = vld [vmem:[#allocation2 + $0x180] sm:$0xff] }
 0x3f3   :  { %976 = vst.msk [vmem:[#allocation2 + $0xa0] sm:$0xff] %vm91_vm0, %v965_v38  ;;  %v1926_v42 = vpack.c.bf16 %v1205_v0, %v1204_v40 }
 0x3f5   :  { %v903_v48 = vpop.permute.xlu1 %902  ;;  %1927 = vmatprep.subr.bf16.mxu1 %v1926_v42  ;;  %v1189_v3 = vld [vmem:[#allocation2 + $0x108] sm:$0xff] }
 0x3f6   :  { %913 = vst.msk [vmem:[#allocation2 + $0x28] sm:$0xff] %vm91_vm0, %v903_v48  ;;  %v901_v39 = vpop.permute.xlu0 %900  ;;  %v1188_v53 = vld [vmem:[#allocation2 + $0x100] sm:$0xff] }
 0x3f7   :  { %912 = vst.msk [vmem:[#allocation2 + $0x20] sm:$0xff] %vm91_vm0, %v901_v39  ;;  %v1928_v63 = vpack.c.bf16 %v1189_v3, %v1188_v53 }
 0x3f9   :  { %v1095_v55 = vpop.permute.xlu1 %1094  ;;  %1929 = vmatpush3.bf16.msra.mxu1 %v1928_v63  ;;  %v1177_v21 = vld [vmem:[#allocation2 + $0xa8] sm:$0xff] }
 0x3fa   :  { %1105 = vst.msk [vmem:[#allocation2 + $0x1a8] sm:$0xff] %vm91_vm0, %v1095_v55  ;;  %v1093_v52 = vpop.permute.xlu0 %1092  ;;  %v1176_v20 = vld [vmem:[#allocation2 + $0xa0] sm:$0xff] }
 0x3fb   :  { %1104 = vst.msk [vmem:[#allocation2 + $0x1a0] sm:$0xff] %vm91_vm0, %v1093_v52  ;;  %v1902_v44 = vpack.c.bf16 %v1177_v21, %v1176_v20 }
 0x3fd   :  { %v1031_v2 = vpop.permute.xlu1 %1030  ;;  %v1161_v54 = vld [vmem:[#allocation2 + $0x28] sm:$0xff] }
 0x3fe   :  { %1041 = vst.msk [vmem:[#allocation2 + $0x128] sm:$0xff] %vm91_vm0, %v1031_v2  ;;  %v1029_v5 = vpop.permute.xlu0 %1028  ;;  %v1160_v25 = vld [vmem:[#allocation2 + $0x20] sm:$0xff] }
 0x3ff   :  { %1040 = vst.msk [vmem:[#allocation2 + $0x120] sm:$0xff] %vm91_vm0, %v1029_v5  ;;  %v1904_v29 = vpack.c.bf16 %v1161_v54, %v1160_v25 }
 0x401   :  { %v983_v6 = vpop.permute.xlu1 %982  ;;  %v1209_v57 = vld [vmem:[#allocation2 + $0x1a8] sm:$0xff] }
 0x402   :  { %993 = vst.msk [vmem:[#allocation2 + $0xc8] sm:$0xff] %vm91_vm0, %v983_v6  ;;  %v981_v7 = vpop.permute.xlu0 %980  ;;  %v1208_v31 = vld [vmem:[#allocation2 + $0x1a0] sm:$0xff] }
 0x403   :  { %992 = vst.msk [vmem:[#allocation2 + $0xc0] sm:$0xff] %vm91_vm0, %v981_v7  ;;  %v1934_v34 = vpack.c.bf16 %v1209_v57, %v1208_v31 }
 0x405   :  { %v919_v1 = vpop.permute.xlu1 %918  ;;  %v1193_v36 = vld [vmem:[#allocation2 + $0x128] sm:$0xff] }
 0x406   :  { %929 = vst.msk [vmem:[#allocation2 + $0x48] sm:$0xff] %vm91_vm0, %v919_v1  ;;  %v917_v45 = vpop.permute.xlu0 %916  ;;  %v1192_v35 = vld [vmem:[#allocation2 + $0x120] sm:$0xff] }
 0x407   :  { %928 = vst.msk [vmem:[#allocation2 + $0x40] sm:$0xff] %vm91_vm0, %v917_v45  ;;  %v1936_v42 = vpack.c.bf16 %v1193_v36, %v1192_v35 }
 0x409   :  { %v1111_v8 = vpop.permute.xlu1 %1110  ;;  %v1181_v53 = vld [vmem:[#allocation2 + $0xc8] sm:$0xff] }
 0x40a   :  { %1121 = vst.msk [vmem:[#allocation2 + $0x1c8] sm:$0xff] %vm91_vm0, %v1111_v8  ;;  %v1109_v58 = vpop.permute.xlu0 %1108  ;;  %v1180_v39 = vld [vmem:[#allocation2 + $0xc0] sm:$0xff] }
 0x40b   :  { %1120 = vst.msk [vmem:[#allocation2 + $0x1c0] sm:$0xff] %vm91_vm0, %v1109_v58  ;;  %v1910_v2 = vpack.c.bf16 %v1181_v53, %v1180_v39 }
 0x40d   :  { %v1047_v41 = vpop.permute.xlu1 %1046  ;;  %v1165_v6 = vld [vmem:[#allocation2 + $0x48] sm:$0xff] }
 0x40e   :  { %1057 = vst.msk [vmem:[#allocation2 + $0x148] sm:$0xff] %vm91_vm0, %v1047_v41  ;;  %v1045_v9 = vpop.permute.xlu0 %1044  ;;  %v1164_v5 = vld [vmem:[#allocation2 + $0x40] sm:$0xff] }
 0x40f   :  { %1056 = vst.msk [vmem:[#allocation2 + $0x140] sm:$0xff] %vm91_vm0, %v1045_v9  ;;  %v1912_v58 = vpack.c.bf16 %v1165_v6, %v1164_v5  ;;  %v1145_v5 = vld [vmem:[%s2850_s6 + $0x28] sm:$0xff] }
 0x411   :  { %v999_v10 = vpop.permute.xlu1 %998 }
 0x412   :  { %1009 = vst.msk [vmem:[#allocation2 + $0xe8] sm:$0xff] %vm91_vm0, %v999_v10  ;;  %v997_v4 = vpop.permute.xlu0 %996 }
 0x413   :  { %1008 = vst.msk [vmem:[#allocation2 + $0xe0] sm:$0xff] %vm91_vm0, %v997_v4  ;;  %v1212_v4 = vld [vmem:[#allocation2 + $0x1c0] sm:$0xff] }
 0x415   :  { %v935_v56 = vpop.permute.xlu1 %934 }
 0x416   :  { %945 = vst.msk [vmem:[#allocation2 + $0x68] sm:$0xff] %vm91_vm0, %v935_v56  ;;  %v933_v61 = vpop.permute.xlu0 %932  ;;  %v1213_v56 = vld [vmem:[#allocation2 + $0x1c8] sm:$0xff] }
 0x417   :  { %944 = vst.msk [vmem:[#allocation2 + $0x60] sm:$0xff] %vm91_vm0, %v933_v61 }
 0x419   :  { %v1127_v49 = vpop.permute.xlu1 %1126  ;;  %v1185_v20 = vld [vmem:[#allocation2 + $0xe8] sm:$0xff] }
 0x41a   :  { %1137 = vst.msk [vmem:[#allocation2 + $0x1e8] sm:$0xff] %vm91_vm0, %v1127_v49  ;;  %v1125_v11 = vpop.permute.xlu0 %1124 }
 0x41b   :  { %1136 = vst.msk [vmem:[#allocation2 + $0x1e0] sm:$0xff] %vm91_vm0, %v1125_v11 }
 0x41d   :  { %v1063_v12 = vpop.permute.xlu1 %1062 }
 0x41e   :  { %1073 = vst.msk [vmem:[#allocation2 + $0x168] sm:$0xff] %vm91_vm0, %v1063_v12  ;;  %v1061_v13 = vpop.permute.xlu0 %1060  ;;  %v1942_v12 = vpack.c.bf16 %v1213_v56, %v1212_v4  ;;  %v1153_v4 = vld [vmem:[%s2850_s6 + $0x68] sm:$0xff]  ;;  %v1152_v56 = vld [vmem:[%s2850_s6 + $0x60] sm:$0xff] }
 0x41f   :  { %1072 = vst.msk [vmem:[#allocation2 + $0x160] sm:$0xff] %vm91_vm0, %v1061_v13  ;;  %v1196_v13 = vld [vmem:[#allocation2 + $0x140] sm:$0xff] }
 0x421   :  { %v955_v14 = vpop.permute.xlu1 %954  ;;  %v1217_v57 = vld [vmem:[#allocation2 + $0x1e8] sm:$0xff] }
 0x422   :  { %963 = vst.msk [vmem:[#allocation2 + $0x98] sm:$0xff] %vm91_vm0, %v955_v14  ;;  %v953_v15 = vpop.permute.xlu0 %952  ;;  %v1197_v14 = vld [vmem:[#allocation2 + $0x148] sm:$0xff]  ;;  %v1216_v31 = vld [vmem:[#allocation2 + $0x1e0] sm:$0xff] }
 0x423   :  { %962 = vst.msk [vmem:[#allocation2 + $0x90] sm:$0xff] %vm91_vm0, %v953_v15  ;;  %v1944_v43 = vpack.c.bf16 %v1197_v14, %v1196_v13  ;;  %v1154_v13 = vld [vmem:[%s2850_s6 + $0x70] sm:$0xff]  ;;  %v2123_v14 = vmov 1  }
 0x424   :  { %1985 = vset.pattern.permute.xlu0 %v2123_v14 }
 0x425   :  { %v1083_v16 = vpop.permute.xlu1 %1082  ;;  %v1201_v36 = vld [vmem:[#allocation2 + $0x168] sm:$0xff] }
 0x426   :  { %1091 = vst.msk [vmem:[#allocation2 + $0x198] sm:$0xff] %vm91_vm0, %v1083_v16  ;;  %v1081_v17 = vpop.permute.xlu0 %1080  ;;  %v1200_v35 = vld [vmem:[#allocation2 + $0x160] sm:$0xff] }
 0x427   :  { %1090 = vst.msk [vmem:[#allocation2 + $0x190] sm:$0xff] %vm91_vm0, %v1081_v17 }
 0x429   :  { %v1019_v18 = vpop.permute.xlu1 %1018  ;;  %v1175_v59 = vld [vmem:[#allocation2 + $0x98] sm:$0xff] }
 0x42a   :  { %1027 = vst.msk [vmem:[#allocation2 + $0x118] sm:$0xff] %vm91_vm0, %v1019_v18  ;;  %v1017_v46 = vpop.permute.xlu0 %1016  ;;  %v1174_v62 = vld [vmem:[#allocation2 + $0x90] sm:$0xff] }
 0x42b   :  { %1026 = vst.msk [vmem:[#allocation2 + $0x110] sm:$0xff] %vm91_vm0, %v1017_v46  ;;  %v1898_v22 = vpack.c.bf16 %v1175_v59, %v1174_v62  ;;  %v1184_v62 = vld [vmem:[#allocation2 + $0xe0] sm:$0xff] }
 0x42d   :  { %v971_v23 = vpop.permute.xlu1 %970  ;;  %1899 = vmatprep.subr.bf16.mxu0 %v1898_v22  ;;  %v1207_v24 = vld [vmem:[#allocation2 + $0x198] sm:$0xff] }
 0x42e   :  { %979 = vst.msk [vmem:[#allocation2 + $0xb8] sm:$0xff] %vm91_vm0, %v971_v23  ;;  %v969_v26 = vpop.permute.xlu0 %968  ;;  %1901 = vmatpush3.bf16.msra.mxu0 %v1900_v50  ;;  %v1206_v27 = vld [vmem:[#allocation2 + $0x190] sm:$0xff]  ;;  %v1918_v23 = vpack.c.bf16 %v1185_v20, %v1184_v62 }
 0x42f   :  { %978 = vst.msk [vmem:[#allocation2 + $0xb0] sm:$0xff] %vm91_vm0, %v969_v26  ;;  %1903 = vmatprep.subr.bf16.mxu0 %v1902_v44  ;;  %v1930_v28 = vpack.c.bf16 %v1207_v24, %v1206_v27  ;;  %v1168_v44 = vld [vmem:[#allocation2 + $0x60] sm:$0xff]  ;;  %v1169_v24 = vld [vmem:[#allocation2 + $0x68] sm:$0xff] }
 0x431   :  { %v907_v47 = vpop.permute.xlu1 %906  ;;  %1931 = vmatprep.subr.bf16.mxu1 %v1930_v28  ;;  %v1191_v30 = vld [vmem:[#allocation2 + $0x118] sm:$0xff]  ;;  %v1920_v28 = vpack.c.bf16 %v1169_v24, %v1168_v44 }
 0x432   :  { %915 = vst.msk [vmem:[#allocation2 + $0x38] sm:$0xff] %vm91_vm0, %v907_v47  ;;  %v905_v32 = vpop.permute.xlu0 %904  ;;  %1905 = vmatpush3.bf16.msra.mxu0 %v1904_v29  ;;  %v1190_v33 = vld [vmem:[#allocation2 + $0x110] sm:$0xff] }
 0x433   :  { %914 = vst.msk [vmem:[#allocation2 + $0x30] sm:$0xff] %vm91_vm0, %v905_v32  ;;  %v1932_v60 = vpack.c.bf16 %v1191_v30, %v1190_v33 }
 0x435   :  { %v1099_v37 = vpop.permute.xlu1 %1098  ;;  %1933 = vmatpush3.bf16.msra.mxu1 %v1932_v60  ;;  %v1179_v51 = vld [vmem:[#allocation2 + $0xb8] sm:$0xff] }
 0x436   :  { %1107 = vst.msk [vmem:[#allocation2 + $0x1b8] sm:$0xff] %vm91_vm0, %v1099_v37  ;;  %1935 = vmatprep.subr.bf16.mxu1 %v1934_v34  ;;  %v1097_v0 = vpop.permute.xlu0 %1096  ;;  %v1178_v38 = vld [vmem:[#allocation2 + $0xb0] sm:$0xff]  ;;  %v1950_v34 = vpack.c.bf16 %v1217_v57, %v1216_v31 }
 0x437   :  { %1106 = vst.msk [vmem:[#allocation2 + $0x1b0] sm:$0xff] %vm91_vm0, %v1097_v0  ;;  %v1906_v40 = vpack.c.bf16 %v1179_v51, %v1178_v38 }
 0x439   :  { %v1035_v48 = vpop.permute.xlu1 %1034  ;;  %1907 = vmatprep.subr.bf16.mxu0 %v1906_v40  ;;  %1937 = vmatpush3.bf16.msra.mxu1 %v1936_v42  ;;  %v1163_v3 = vld [vmem:[#allocation2 + $0x38] sm:$0xff]  ;;  %v1952_v42 = vpack.c.bf16 %v1201_v36, %v1200_v35 }
 0x43a   :  { %1043 = vst.msk [vmem:[#allocation2 + $0x138] sm:$0xff] %vm91_vm0, %v1035_v48  ;;  %v1033_v63 = vpop.permute.xlu0 %1032  ;;  %v1162_v55 = vld [vmem:[#allocation2 + $0x30] sm:$0xff] }
 0x43b   :  { %1042 = vst.msk [vmem:[#allocation2 + $0x130] sm:$0xff] %vm91_vm0, %v1033_v63  ;;  %v1908_v52 = vpack.c.bf16 %v1163_v3, %v1162_v55  ;;  %v1140_v55 = vld [vmem:[%s2850_s6] sm:$0xff] }
 0x43d   :  { %v987_v7 = vpop.permute.xlu1 %986  ;;  %1909 = vmatpush3.bf16.msra.mxu0 %v1908_v52  ;;  %v1211_v1 = vld [vmem:[#allocation2 + $0x1b8] sm:$0xff] }
 0x43e   :  { %995 = vst.msk [vmem:[#allocation2 + $0xd8] sm:$0xff] %vm91_vm0, %v987_v7  ;;  %v985_v45 = vpop.permute.xlu0 %984  ;;  %1911 = vmatprep.subr.bf16.mxu0 %v1910_v2  ;;  %v1210_v8 = vld [vmem:[#allocation2 + $0x1b0] sm:$0xff]  ;;  %v1144_v7 = vld [vmem:[%s2850_s6 + $0x20] sm:$0xff] }
 0x43f   :  { %994 = vst.msk [vmem:[#allocation2 + $0xd0] sm:$0xff] %vm91_vm0, %v985_v45  ;;  %v1938_v41 = vpack.c.bf16 %v1211_v1, %v1210_v8  ;;  %v1149_v8 = vld [vmem:[%s2850_s6 + $0x48] sm:$0xff] }
 0x441   :  { %v923_v9 = vpop.permute.xlu1 %922  ;;  %1913 = vmatpush3.bf16.msra.mxu0 %v1912_v58  ;;  %1939 = vmatprep.subr.bf16.mxu1 %v1938_v41  ;;  %v1195_v10 = vld [vmem:[#allocation2 + $0x138] sm:$0xff]  ;;  %v1148_v41 = vld [vmem:[%s2850_s6 + $0x40] sm:$0xff] }
 0x442   :  { %931 = vst.msk [vmem:[#allocation2 + $0x58] sm:$0xff] %vm91_vm0, %v923_v9  ;;  %v921_v61 = vpop.permute.xlu0 %920  ;;  %v1194_v49 = vld [vmem:[#allocation2 + $0x130] sm:$0xff] }
 0x443   :  { %930 = vst.msk [vmem:[#allocation2 + $0x50] sm:$0xff] %vm91_vm0, %v921_v61  ;;  %v1940_v11 = vpack.c.bf16 %v1195_v10, %v1194_v49  ;;  %v1142_v9 = vld [vmem:[%s2850_s6 + $0x10] sm:$0xff]  ;;  %v1147_v10 = vld [vmem:[%s2850_s6 + $0x38] sm:$0xff] }
 0x444   :  { %v1146_v61 = vld [vmem:[%s2850_s6 + $0x30] sm:$0xff]  ;;  %v1151_v49 = vld [vmem:[%s2850_s6 + $0x58] sm:$0xff] }
 0x445   :  { %v1115_v15 = vpop.permute.xlu1 %1114  ;;  %1941 = vmatpush3.bf16.msra.mxu1 %v1940_v11  ;;  %v1183_v16 = vld [vmem:[#allocation2 + $0xd8] sm:$0xff]  ;;  %v1150_v11 = vld [vmem:[%s2850_s6 + $0x50] sm:$0xff] }
 0x446   :  { %1123 = vst.msk [vmem:[#allocation2 + $0x1d8] sm:$0xff] %vm91_vm0, %v1115_v15  ;;  %1943 = vmatprep.subr.bf16.mxu1 %v1942_v12  ;;  %v1113_v17 = vpop.permute.xlu0 %1112  ;;  %v1182_v18 = vld [vmem:[#allocation2 + $0xd0] sm:$0xff]  ;;  %v1155_v12 = vld [vmem:[%s2850_s6 + $0x78] sm:$0xff] }
 0x447   :  { %1122 = vst.msk [vmem:[#allocation2 + $0x1d0] sm:$0xff] %vm91_vm0, %v1113_v17  ;;  %v1914_v59 = vpack.c.bf16 %v1183_v16, %v1182_v18 }
 0x449   :  { %v1051_v19 = vpop.permute.xlu1 %1050  ;;  %1915 = vmatprep.subr.bf16.mxu0 %v1914_v59  ;;  %1945 = vmatpush3.bf16.msra.mxu1 %v1944_v43  ;;  %v1167_v46 = vld [vmem:[#allocation2 + $0x58] sm:$0xff] }
 0x44a   :  { %1059 = vst.msk [vmem:[#allocation2 + $0x158] sm:$0xff] %vm91_vm0, %v1051_v19  ;;  %v1049_v21 = vpop.permute.xlu0 %1048  ;;  %v1166_v22 = vld [vmem:[#allocation2 + $0x50] sm:$0xff] }
 0x44b   :  { %1058 = vst.msk [vmem:[#allocation2 + $0x150] sm:$0xff] %vm91_vm0, %v1049_v21  ;;  %v1916_v50 = vpack.c.bf16 %v1167_v46, %v1166_v22 }
 0x44d   :  { %v1003_v25 = vpop.permute.xlu1 %1002  ;;  %1917 = vmatpush3.bf16.msra.mxu0 %v1916_v50  ;;  %v1215_v54 = vld [vmem:[#allocation2 + $0x1d8] sm:$0xff] }
 0x44e   :  { %1011 = vst.msk [vmem:[#allocation2 + $0xf8] sm:$0xff] %vm91_vm0, %v1003_v25  ;;  %v1001_v26 = vpop.permute.xlu0 %1000  ;;  %1919 = vmatprep.subr.bf16.mxu0 %v1918_v23  ;;  %v1214_v27 = vld [vmem:[#allocation2 + $0x1d0] sm:$0xff] }
 0x44f   :  { %1010 = vst.msk [vmem:[#allocation2 + $0xf0] sm:$0xff] %vm91_vm0, %v1001_v26  ;;  %v1946_v29 = vpack.c.bf16 %v1215_v54, %v1214_v27 }
 0x451   :  { %v939_v47 = vpop.permute.xlu1 %938  ;;  %1921 = vmatpush3.bf16.msra.mxu0 %v1920_v28  ;;  %1947 = vmatprep.subr.bf16.mxu1 %v1946_v29  ;;  %v1199_v30 = vld [vmem:[#allocation2 + $0x158] sm:$0xff] }
 0x452   :  { %947 = vst.msk [vmem:[#allocation2 + $0x78] sm:$0xff] %vm91_vm0, %v939_v47  ;;  %v937_v32 = vpop.permute.xlu0 %936  ;;  %v1198_v33 = vld [vmem:[#allocation2 + $0x150] sm:$0xff] }
 0x453   :  { %946 = vst.msk [vmem:[#allocation2 + $0x70] sm:$0xff] %vm91_vm0, %v937_v32  ;;  %v1948_v60 = vpack.c.bf16 %v1199_v30, %v1198_v33 }
 0x455   :  { %v1131_v37 = vpop.permute.xlu1 %1130  ;;  %1949 = vmatpush3.bf16.msra.mxu1 %v1948_v60  ;;  %v1187_v51 = vld [vmem:[#allocation2 + $0xf8] sm:$0xff] }
 0x456   :  { %1139 = vst.msk [vmem:[#allocation2 + $0x1f8] sm:$0xff] %vm91_vm0, %v1131_v37  ;;  %1951 = vmatprep.subr.bf16.mxu1 %v1950_v34  ;;  %v1129_v0 = vpop.permute.xlu0 %1128  ;;  %v1186_v38 = vld [vmem:[#allocation2 + $0xf0] sm:$0xff] }
 0x457   :  { %1138 = vst.msk [vmem:[#allocation2 + $0x1f0] sm:$0xff] %vm91_vm0, %v1129_v0  ;;  %v1922_v40 = vpack.c.bf16 %v1187_v51, %v1186_v38 }
 0x459   :  { %v1067_v48 = vpop.permute.xlu1 %1066  ;;  %1923 = vmatprep.subr.bf16.mxu0 %v1922_v40  ;;  %1953 = vmatpush3.bf16.msra.mxu1 %v1952_v42  ;;  %v1171_v3 = vld [vmem:[#allocation2 + $0x78] sm:$0xff] }
 0x45a   :  { %1075 = vst.msk [vmem:[#allocation2 + $0x178] sm:$0xff] %vm91_vm0, %v1067_v48  ;;  %v1065_v39 = vpop.permute.xlu0 %1064  ;;  %v1170_v53 = vld [vmem:[#allocation2 + $0x70] sm:$0xff] }
 0x45b   :  { %1074 = vst.msk [vmem:[#allocation2 + $0x170] sm:$0xff] %vm91_vm0, %v1065_v39  ;;  %v1924_v63 = vpack.c.bf16 %v1171_v3, %v1170_v53 }
 0x45d   :  { %1925 = vmatpush3.bf16.msra.mxu0 %v1924_v63  ;;  %v1219_v52 = vld [vmem:[#allocation2 + $0x1f8] sm:$0xff] }
 0x45e   :  { %v1218_v2 = vld [vmem:[#allocation2 + $0x1f0] sm:$0xff] }
 0x45f   :  { %v1954_v6 = vpack.c.bf16 %v1219_v52, %v1218_v2 }
 0x460   :  { %1309 = vmatmul.mubr.f32.vlgmr.msra.gmra.mrb[12].mxu0 %v1140_v55 }
 0x461   :  { %1955 = vmatprep.subr.bf16.mxu1 %v1954_v6  ;;  %1313 = vmatprep.mubr.f32.mxu0 %v1145_v5  ;;  %v1203_v1 = vld [vmem:[#allocation2 + $0x178] sm:$0xff]  ;;  %v1473_v5 = vld [vmem:[#allocation8 + $0x20] sm:$0xff] }
 0x462   :  { %v1202_v45 = vld [vmem:[#allocation2 + $0x170] sm:$0xff]  ;;  %v1440_v6 = vld [vmem:[#allocation8] sm:$0xff] }
 0x463   :  { %v1956_v58 = vpack.c.bf16 %v1203_v1, %v1202_v45  ;;  %v1506_v1 = vld [vmem:[#allocation8 + $0x40] sm:$0xff] }
 0x464   :  { %1314 = vmatmul.mubr.f32.gmra.mrb[14].mxu0 %v1144_v7 }
 0x465   :  { %1957 = vmatpush3.bf16.msra.mxu1 %v1956_v58  ;;  %1318 = vmatprep.mubr.f32.mxu0 %v1149_v8 }
 0x468   :  { %1319 = vmatmul.mubr.f32.gmra.mrb[16].mxu0 %v1148_v41  ;;  %1394 = vmatmul.mubr.f32.vlgmr.msra.gmra.mrb[12].mxu1 %v1142_v9  ;;  %v1474_v9 = vld [vmem:[#allocation8 + $0x28] sm:$0xff] }
 0x469   :  { %1398 = vmatprep.mubr.f32.mxu1 %v1147_v10  ;;  %1323 = vmatprep.mubr.f32.mxu0 %v1153_v4 }
 0x46a   :  { %v1232_v44 = vpop.permute.xlu1 %1231 }
 0x46b   :  { %v1227_v19 = vpop.permute.xlu0 %1226 }
 0x46c   :  { %1324 = vmatmul.mubr.f32.gmra.mrb[18].mxu0 %v1152_v56  ;;  %1399 = vmatmul.mubr.f32.gmra.mrb[14].mxu1 %v1146_v61 }
 0x46d   :  { %1403 = vmatprep.mubr.f32.mxu1 %v1151_v49  ;;  %v1539_v49 = vld [vmem:[#allocation8 + $0x60] sm:$0xff] }
 0x46e   :  { %v1242_v38 = vpop.permute.xlu1 %1241 }
 0x46f   :  { %v1237_v33 = vpop.permute.xlu0 %1236 }
 0x470   :  { %1404 = vmatmul.mubr.f32.gmra.mrb[16].mxu1 %v1150_v11  ;;  %v1507_v11 = vld [vmem:[#allocation8 + $0x48] sm:$0xff] }
 0x471   :  { %1408 = vmatprep.mubr.f32.mxu1 %v1155_v12 }
 0x474   :  { %1409 = vmatmul.mubr.f32.gmra.mrb[18].mxu1 %v1154_v13 }
 0x533   :  { %v1746_v15 = vpop.f32.mrb[12].mxu0 }
 0x534   :  { %v1747_v16 = vpop.f32.mrb[13].mxu0 }
 0x535   :  { %v1748_v17 = vadd.f32 %v1747_v16, %v1746_v15 }
 0x537   :  { %v1749_v18 = vpop.f32.mrb[14].mxu0  ;;  %v1311_v22 = vadd.f32 %v1748_v17, %v1227_v19 }
 0x538   :  { %v1750_v59 = vpop.f32.mrb[15].mxu0 }
 0x539   :  { %v1751_v43 = vadd.f32 %v1750_v59, %v1749_v18  ;;  %v1441_v59 = vld [vmem:[#allocation8 + $0x8] sm:$0xff] }
 0x53b   :  { %v1752_v46 = vpop.f32.mrb[16].mxu0  ;;  %v1790_v62 = vpop.f32.mrb[12].mxu1  ;;  %v1316_v28 = vadd.f32 %v1751_v43, %v1232_v44  ;;  %v1540_v43 = vld [vmem:[#allocation8 + $0x68] sm:$0xff]  ;;  %v1442_v44 = vld [vmem:[#allocation8 + $0x10] sm:$0xff] }
 0x53c   :  { %v1753_v20 = vpop.f32.mrb[17].mxu0  ;;  %v1791_v21 = vpop.f32.mrb[13].mxu1 }
 0x53d   :  { %v1754_v50 = vadd.f32 %v1753_v20, %v1752_v46  ;;  %v1792_v23 = vadd.f32 %v1791_v21, %v1790_v62 }
 0x53f   :  { %v1396_v24 = vadd.f32 %v1792_v23, %v1311_v22  ;;  %v1755_v25 = vpop.f32.mrb[18].mxu0  ;;  %v1793_v54 = vpop.f32.mrb[14].mxu1  ;;  %v1321_v34 = vadd.f32 %v1754_v50, %v1237_v33  ;;  %v1475_v23 = vld [vmem:[#allocation8 + $0x30] sm:$0xff]  ;;  %v1476_v33 = vld [vmem:[#allocation8 + $0x38] sm:$0xff] }
 0x540   :  { %v1756_v26 = vpop.f32.mrb[19].mxu0  ;;  %v1794_v27 = vpop.f32.mrb[15].mxu1 }
 0x541   :  { %v1418_v29 = vmin.f32 %v1396_v24, 0.0  ;;  %v1757_v47 = vadd.f32 %v1756_v26, %v1755_v25  ;;  %v1795_v30 = vadd.f32 %v1794_v27, %v1793_v54  ;;  %vm1414_vm6 = vcmp.gt.f32.partialorder %v1396_v24, 0.0 }
 0x543   :  { %v1422_v31 = vmul.f32 1.442695, %v1418_v29  ;;  %v1401_v57 = vadd.f32 %v1795_v30, %v1316_v28  ;;  %v1796_v32 = vpop.f32.mrb[16].mxu1  ;;  %v1326_v42 = vadd.f32 %v1757_v47, %v1242_v38  ;;  %v1508_v28 = vld [vmem:[#allocation8 + $0x50] sm:$0xff]  ;;  %v1443_v29 = vld [vmem:[#allocation8 + $0x18] sm:$0xff] }
 0x544   :  { %v1797_v60 = vpop.f32.mrb[17].mxu1 }
 0x545   :  { %1994 = vpow2.f32 %v1422_v31  ;;  %v1419_v35 = vmin.f32 %v1401_v57, 0.0  ;;  %v1798_v36 = vadd.f32 %v1797_v60, %v1796_v32  ;;  %vm1415_vm7 = vcmp.gt.f32.partialorder %v1401_v57, 0.0  ;;  %v1541_v32 = vld [vmem:[#allocation8 + $0x70] sm:$0xff] }
 0x547   :  { %v1424_v37 = vmul.f32 1.442695, %v1419_v35  ;;  %v1406_v51 = vadd.f32 %v1798_v36, %v1321_v34  ;;  %v1799_v0 = vpop.f32.mrb[18].mxu1 }
 0x548   :  { %v1800_v40 = vpop.f32.mrb[19].mxu1 }
 0x549   :  { %1996 = vpow2.f32 %v1424_v37  ;;  %v1420_v48 = vmin.f32 %v1406_v51, 0.0  ;;  %v1801_v3 = vadd.f32 %v1800_v40, %v1799_v0  ;;  %vm1416_vm8 = vcmp.gt.f32.partialorder %v1406_v51, 0.0  ;;  %v1509_v37 = vld [vmem:[#allocation8 + $0x58] sm:$0xff] }
 0x54a   :  { %v1542_v40 = vld [vmem:[#allocation8 + $0x78] sm:$0xff] }
 0x54b   :  { %v1426_v39 = vmul.f32 1.442695, %v1420_v48  ;;  %v1411_v53 = vadd.f32 %v1801_v3, %v1326_v42 }
 0x54d   :  { %1998 = vpow2.f32 %v1426_v39  ;;  %v1421_v63 = vmin.f32 %v1411_v53, 0.0  ;;  %vm1417_vm9 = vcmp.gt.f32.partialorder %v1411_v53, 0.0  ;;  %v1439_v39 = vld [vmem:[%s2855_s11] sm:$0x3] }
 0x54f   :  { %v1995_v55 = vpop.eup %1994  ;;  %v1428_v52 = vmul.f32 1.442695, %v1421_v63 }
 0x550   :  { %v1689_v2 = vadd.f32 -1.0, %v1995_v55 }
 0x551   :  { %2000 = vpow2.f32 %v1428_v52 }
 0x552   :  { %v1434_v7 = vsel %vm1414_vm6, %v1396_v24, %v1689_v2 }
 0x553   :  { %v1997_v45 = vpop.eup %1996  ;;  %v1477_v8 = vmul.f32 %v1473_v5, %v1434_v7  ;;  %v1444_v58 = vmul.f32 %v1440_v6, %v1434_v7  ;;  %v1510_v56 = vmul.f32 %v1506_v1, %v1434_v7  ;;  %v1543_v16 = vmul.f32 %v1539_v49, %v1434_v7  ;;  %v1438_v6 = vld [vmem:[%s2854_s10] sm:$0xf] }
 0x554   :  { %v1690_v41 = vadd.f32 -1.0, %v1997_v45 }
 0x555   :  { %v1481_v10 = vsel %vm91_vm0, %v1477_v8, 0.0  ;;  %v1448_v4 = vsel %vm91_vm0, %v1444_v58, 0.0  ;;  %v1514_v14 = vsel %vm91_vm0, %v1510_v56, 0.0  ;;  %v1547_v46 = vsel %vm91_vm0, %v1543_v16, 0.0 }
 0x556   :  { %v1435_v61 = vsel %vm1415_vm7, %v1401_v57, %v1690_v41  ;;  %1482 = vadd.xlane.f32.xlu1 %v1481_v10  ;;  %1449 = vadd.xlane.f32.xlu0 %v1448_v4 }
 0x557   :  { %v1999_v12 = vpop.eup %1998  ;;  %v1478_v13 = vmul.f32 %v1474_v9, %v1435_v61  ;;  %v1511_v17 = vmul.f32 %v1507_v11, %v1435_v61  ;;  %v1445_v20 = vmul.f32 %v1441_v59, %v1435_v61  ;;  %v1544_v21 = vmul.f32 %v1540_v43, %v1435_v61 }
 0x558   :  { %v1691_v18 = vadd.f32 -1.0, %v1999_v12 }
 0x559   :  { %v1484_v15 = vsel %vm91_vm0, %v1478_v13, 0.0  ;;  %v1517_v62 = vsel %vm91_vm0, %v1511_v17, 0.0  ;;  %v1451_v24 = vsel %vm91_vm0, %v1445_v20, 0.0  ;;  %v1550_v25 = vsel %vm91_vm0, %v1544_v21, 0.0 }
 0x55a   :  { %1515 = vadd.xlane.f32.xlu1 %v1514_v14  ;;  %1485 = vadd.xlane.f32.xlu0 %v1484_v15  ;;  %v1436_v22 = vsel %vm1416_vm8, %v1406_v51, %v1691_v18 }
 0x55b   :  { %v2001_v19 = vpop.eup %2000  ;;  %v1479_v54 = vmul.f32 %v1475_v23, %v1436_v22  ;;  %v1446_v26 = vmul.f32 %v1442_v44, %v1436_v22  ;;  %v1512_v31 = vmul.f32 %v1508_v28, %v1436_v22  ;;  %v1545_v35 = vmul.f32 %v1541_v32, %v1436_v22 }
 0x55c   :  { %v1692_v50 = vadd.f32 -1.0, %v2001_v19 }
 0x55d   :  { %v1487_v47 = vsel %vm91_vm0, %v1479_v54, 0.0  ;;  %v1454_v30 = vsel %vm91_vm0, %v1446_v26, 0.0  ;;  %v1520_v60 = vsel %vm91_vm0, %v1512_v31, 0.0  ;;  %v1553_v51 = vsel %vm91_vm0, %v1545_v35, 0.0 }
 0x55e   :  { %1548 = vadd.xlane.f32.xlu1 %v1547_v46  ;;  %1518 = vadd.xlane.f32.xlu0 %v1517_v62  ;;  %v1437_v27 = vsel %vm1417_vm9, %v1411_v53, %v1692_v50  ;;  %v1460_v53 = vlaneseq }
 0x55f   :  { %v1447_v57 = vmul.f32 %v1443_v29, %v1437_v27  ;;  %v1480_v36 = vmul.f32 %v1476_v33, %v1437_v27  ;;  %v1513_v38 = vmul.f32 %v1509_v37, %v1437_v27  ;;  %v1546_v48 = vmul.f32 %v1542_v40, %v1437_v27 }
 0x560   :  { %v1461_v63 = vshrl.u32 %v1460_v53, 7 }
 0x561   :  { %v1457_v34 = vsel %vm91_vm0, %v1447_v57, 0.0  ;;  %v1490_v0 = vsel %vm91_vm0, %v1480_v36, 0.0  ;;  %v1523_v42 = vsel %vm91_vm0, %v1513_v38, 0.0  ;;  %v1556_v3 = vsel %vm91_vm0, %v1546_v48, 0.0 }
 0x562   :  { %1452 = vadd.xlane.f32.xlu1 %v1451_v24  ;;  %1551 = vadd.xlane.f32.xlu0 %v1550_v25  ;;  %v1495_v2 = vsub.s32 1, %v1461_v63  ;;  %v1462_v5 = vsub.s32 0, %v1461_v63  ;;  %v1528_v45 = vsub.s32 2, %v1461_v63  ;;  %v1561_v41 = vsub.s32 3, %v1461_v63 }
 0x564   :  { %v1496_v8 = vrot.slane %v1438_v6, %v1495_v2  ;;  %v1463_v58 = vrot.slane %v1438_v6, %v1462_v5  ;;  %v1529_v4 = vrot.slane %v1438_v6, %v1528_v45  ;;  %v1562_v49 = vrot.slane %v1438_v6, %v1561_v41 }
 0x566   :  { %1488 = vadd.xlane.f32.xlu1 %v1487_v47  ;;  %1455 = vadd.xlane.f32.xlu0 %v1454_v30 }
 0x56a   :  { %1521 = vadd.xlane.f32.xlu1 %v1520_v60  ;;  %1458 = vadd.xlane.f32.xlu0 %v1457_v34 }
 0x56e   :  { %1554 = vadd.xlane.f32.xlu1 %v1553_v51  ;;  %1491 = vadd.xlane.f32.xlu0 %v1490_v0 }
 0x572   :  { %1524 = vadd.xlane.f32.xlu0 %v1523_v42 }
 0x576   :  { %1557 = vadd.xlane.f32.xlu0 %v1556_v3 }
 0x57f   :  { %1583 = vperm.xlu1 %1984, %v1439_v39  }
 0x58c   :  { %1598 = vperm.xlu0 %1985, %v1439_v39  }
 0x5e3   :  { %v1483_v55 = vpop.xlane.xlu1 %1482  ;;  %v1450_v52 = vpop.xlane.xlu0 %1449 }
 0x5e4   :  { %v1497_v56 = vmul.f32 %v1496_v8, %v1483_v55  ;;  %v1464_v61 = vmul.f32 %v1463_v58, %v1450_v52 }
 0x5e6   :  { %v1501_v16 = vadd.f32 %v1497_v56, %v1464_v61 }
 0x5e7   :  { %v1516_v7 = vpop.xlane.xlu1 %1515  ;;  %v1486_v1 = vpop.xlane.xlu0 %1485 }
 0x5e8   :  { %v1530_v13 = vmul.f32 %v1529_v4, %v1516_v7  ;;  %v1498_v14 = vmul.f32 %v1496_v8, %v1486_v1 }
 0x5ea   :  { %v1534_v46 = vadd.f32 %v1530_v13, %v1501_v16 }
 0x5eb   :  { %v1549_v9 = vpop.xlane.xlu1 %1548  ;;  %v1519_v10 = vpop.xlane.xlu0 %1518 }
 0x5ec   :  { %v1563_v17 = vmul.f32 %v1562_v49, %v1549_v9  ;;  %v1531_v18 = vmul.f32 %v1529_v4, %v1519_v10  ;;  %v1693_v9 = vld [vmem:[%s2853_s9] ss:$0 sm:$0xff]  ;;  %s2072_s9 = scalar_lea.vmem %s1632_s2, 32 }
 0x5ed   :  { %p2073_p10 = scmp.ne.s32.totalorder %s1632_s2, %s2072_s9  ;;  %p2078_p12 = scmp.lt.s32.totalorder %s2072_s9, %s2072_s9 }
 0x5ee   :  { %v1567_v21 = vadd.f32 %v1563_v17, %v1534_v46 }
 0x5ef   :  { %v1453_v11 = vpop.xlane.xlu1 %1452  ;;  %v1552_v12 = vpop.xlane.xlu0 %1551  ;;  %p2079_p13 = por %p2078_p12, %p2077_p11 }
 0x5f0   :  { %v1465_v15 = vmul.f32 %v1463_v58, %v1453_v11  ;;  %v1564_v20 = vmul.f32 %v1562_v49, %v1552_v12  ;;  %v1572_v24 = vsel %vm1571_vm10, %v1567_v21, 0.0 }
 0x5f1   :  { %p2080_p0 = pnand %p2079_p13, %p2073_p10 }
 0x5f2   :  { %v1502_v59 = vadd.f32 %v1498_v14, %v1465_v15 }
 0x5f3   :  { %v1489_v43 = vpop.xlane.xlu1 %1488  ;;  %v1456_v19 = vpop.xlane.xlu0 %1455 }
 0x5f4   :  { %v1535_v62 = vadd.f32 %v1531_v18, %v1502_v59  ;;  %v1499_v26 = vmul.f32 %v1496_v8, %v1489_v43  ;;  %v1466_v27 = vmul.f32 %v1463_v58, %v1456_v19 }
 0x5f6   :  { %v1568_v22 = vadd.f32 %v1564_v20, %v1535_v62  ;;  %v1503_v57 = vadd.f32 %v1499_v26, %v1466_v27 }
 0x5f7   :  { %v1522_v50 = vpop.xlane.xlu1 %1521  ;;  %v1459_v23 = vpop.xlane.xlu0 %1458 }
 0x5f8   :  { %v1573_v44 = vsel %vm1571_vm10, %v1568_v22, 0.0  ;;  %v1532_v29 = vmul.f32 %v1529_v4, %v1522_v50  ;;  %v1467_v32 = vmul.f32 %v1463_v58, %v1459_v23 }
 0x5f9   :  { %v1574_v25 = vadd.f32 %v1573_v44, %v1572_v24 }
 0x5fa   :  { %v1536_v34 = vadd.f32 %v1532_v29, %v1503_v57 }
 0x5fb   :  { %v1492_v54 = vpop.xlane.xlu0 %1491  ;;  %v1555_v28 = vpop.xlane.xlu1 %1554  ;;  %v1575_v30 = vrot.slane %v1574_v25, 4 }
 0x5fc   :  { %v1500_v47 = vmul.f32 %v1496_v8, %v1492_v54  ;;  %v1565_v33 = vmul.f32 %v1562_v49, %v1555_v28 }
 0x5fd   :  { %v1576_v36 = vadd.f32 %v1575_v30, %v1574_v25 }
 0x5fe   :  { %v1504_v35 = vadd.f32 %v1500_v47, %v1467_v32  ;;  %v1569_v51 = vadd.f32 %v1565_v33, %v1536_v34 }
 0x5ff   :  { %v1525_v31 = vpop.xlane.xlu0 %1524  ;;  %v1577_v42 = vrot.slane %v1576_v36, 2  ;;  %v1584_v8 = vpop.permute.xlu1 %1583 }
 0x600   :  { %v1533_v60 = vmul.f32 %v1529_v4, %v1525_v31  ;;  %v1588_v48 = vsel %vm1571_vm10, %v1569_v51, 0.0 }
 0x601   :  { %v1578_v53 = vadd.f32 %v1577_v42, %v1576_v36 }
 0x602   :  { %v1537_v0 = vadd.f32 %v1533_v60, %v1504_v35 }
 0x603   :  { %v1558_v37 = vpop.xlane.xlu0 %1557  ;;  %v1579_v52 = vrot.slane %v1578_v53, 1 }
 0x604   :  { %v1566_v38 = vmul.f32 %v1562_v49, %v1558_v37 }
 0x605   :  { %v1580_v6 = vadd.f32 %v1579_v52, %v1578_v53 }
 0x606   :  { %v1570_v40 = vadd.f32 %v1566_v38, %v1537_v0 }
 0x607   :  { %v1586_v58 = vmul.f32 %v1584_v8, %v1580_v6 }
 0x608   :  { %v1589_v3 = vsel %vm1571_vm10, %v1570_v40, 0.0 }
 0x609   :  { %v1590_v39 = vadd.f32 %v1589_v3, %v1588_v48 }
 0x60b   :  { %v1591_v63 = vrot.slane %v1590_v39, 4  ;;  %v1599_v1 = vpop.permute.xlu0 %1598 }
 0x60d   :  { %v1592_v55 = vadd.f32 %v1591_v63, %v1590_v39 }
 0x60f   :  { %v1593_v2 = vrot.slane %v1592_v55, 2 }
 0x611   :  { %v1594_v5 = vadd.f32 %v1593_v2, %v1592_v55 }
 0x613   :  { %v1595_v7 = vrot.slane %v1594_v5, 1 }
 0x615   :  { %v1596_v45 = vadd.f32 %v1595_v7, %v1594_v5 }
 0x617   :  { %v1601_v41 = vmul.f32 %v1599_v1, %v1596_v45 }
 0x619   :  { %v1602_v10 = vadd.f32 %v1601_v41, %v1586_v58 }
 0x61b   :  { %v1610_v4 = vadd.f32 %v1693_v9, %v1602_v10 }
 0x61d   :  { %v1612_v56 = vsel %vm1611_vm11, %v1610_v4, -inf }
 0x61e   :  { %1613 = vmax.xlane.f32.xlu1 %v1612_v56 }
 0x6ab   :  { %v1614_v61 = vpop.xlane.xlu1 %1613 }
 0x6ac   :  { %v1615_v49 = vsub.f32 %v1610_v4, %v1614_v61 }
 0x6ae   :  { %v1616_v11 = vmul.f32 1.442695, %v1615_v49 }
 0x6b0   :  { %2002 = vpow2.f32 %v1616_v11 }
 0x6ba   :  { %v2003_v12 = vpop.eup %2002 }
 0x6bb   :  { %v1618_v13 = vsel %vm1611_vm11, %v2003_v12, 0.0 }
 0x6bc   :  { %1619 = vadd.xlane.f32.xlu0 %v1618_v13 }
 0x749   :  { %v1620_v14 = vpop.xlane.xlu0 %1619 }
 0x74a   :  { %2004 = vlog2.f32 %v1620_v14 }
 0x754   :  { %v2005_v15 = vpop.eup %2004 }
 0x755   :  { %v1622_v16 = vmul.f32 0.6931472, %v2005_v15 }
 0x757   :  { %v1623_v17 = vsub.f32 %v1615_v49, %v1622_v16 }
 0x759   :  { %1624 = vst.msk [vmem:[#allocation9] sm:$0x3] %vm1611_vm11, %v1623_v17 }
 0x75a   :  { %2083 = shalt.err (!%p2080_p0)
}
 0x75b   :  { %s2084_s1 = scalar_lea.hbm %s2856_s12, 32 }
 0x75c   :  { %p2085_p1 = scmp.ne.s32.totalorder %s2856_s12, %s2084_s1  ;;  %p2088_p2 = scmp.lt.u32.totalorder %s2084_s1, %s2856_s12 }
 0x75e   :  { %p2090_p3 = pnand %p2088_p2, %p2085_p1 }
 0x760   :  { %2093 = shalt.err (!%p2090_p3)
}
 0x761   :  { %1634 = dma.vmem_to_hbm [thread:$0]  %s1632_s2, 32, %s2856_s12, [#allocation5]  }
 0x762   :  { %2098 = dma.done.wait [#allocation5], 32  }
 0x763   :  { %2099 = vsyncadd [#allocation5], 4294967264 }
 0x764   :  { %1638 = vsyncpa [#allocation4], 1 }
 0x765   :  { %1639 = vsyncpa [#allocation7], 1 }
 0x766   :  { %1640 = vsyncpa [#allocation5], 1 }

</bundles_post_ra>
